<compile_context>
chip_gen: v7x
topology: tpu7x:2x2x1
jax: 0.10.0
libtpu: 0.0.40
codegen_flags: <defaults>
</compile_context>

<pallas_src>
import functools
import math

import jax
import jax.numpy as jnp
from jax.experimental import pallas as pl
from jax.experimental.pallas import tpu as pltpu


NEG_INF = -1e30  # finite stand-in for -inf; safe because the band always contains the diagonal


# ----------------------------------------------------------------------------
# Fused Pallas kernel: one batch tile per grid step.
# ----------------------------------------------------------------------------
def _frame_attn_block_kernel(
    x_ref,      # (Bt, S, D)  input activations (f32)
    wqkv_ref,   # (2, D, 3*D) bf16, lane-dense fused QKV (Q columns pre-scaled by 1/sqrt(hd))
    bqkv_ref,   # (2, 1, 3*D) f32  fused QKV bias (Q part pre-scaled)
    wo_ref,     # (2, D, D)   bf16 output projection (= out_proj.weight.T)
    bo_ref,     # (2, 1, D)   f32
    g_ref,      # (2, 1, D)   f32 LayerNorm gamma
    be_ref,     # (2, 1, D)   f32 LayerNorm beta
    o_ref,      # (Bt, S, D)
    *,
    num_heads,
    window,
):
  Bt, S, D = x_ref.shape
  hd = D // num_heads

  # Flat (Bt*S, D) view for all dense (projection / norm / residual) math:
  # merging leading (non-lane) dims is layout-free and amortizes per-step overhead.
  x = x_ref[...].astype(jnp.float32).reshape(Bt * S, D)

  def mha(h_flat, layer, banded):
    # ---- fused QKV projection: ONE wide bf16 MXU dot, f32 accumulation ----
    qkv = jnp.dot(h_flat.astype(jnp.bfloat16), wqkv_ref[layer],
                  preferred_element_type=jnp.float32)
    qkv = qkv + bqkv_ref[layer]              # single broadcast bias add (Q part pre-scaled)
    qkv = qkv.reshape(Bt, S, 3 * D)

    # In-kernel banded mask (no (S,S) mask operand); hoisted out of the head loop.
    band = None
    if banded:
      rows = jax.lax.broadcasted_iota(jnp.int32, (Bt, S, S), 1)
      cols = jax.lax.broadcasted_iota(jnp.int32, (Bt, S, S), 2)
      band = jnp.abs(rows - cols) <= window

    # ---- per-head attention (static unrolled loop; hd is intrinsically narrow) ----
    heads = []
    for h in range(num_heads):
      q = qkv[:, :, h * hd:(h + 1) * hd].astype(jnp.bfloat16)
      k = qkv[:, :, D + h * hd:D + (h + 1) * hd].astype(jnp.bfloat16)
      v = qkv[:, :, 2 * D + h * hd:2 * D + (h + 1) * hd].astype(jnp.bfloat16)

      s = jnp.einsum("bqd,bkd->bqk", q, k,
                     preferred_element_type=jnp.float32)           # (Bt, S, S)
      if band is not None:
        s = jnp.where(band, s, NEG_INF)
      s = s - jnp.max(s, axis=-1, keepdims=True)
      p = jnp.exp(s)
      # divide -> approx reciprocal on the otherwise-idle EUP slot
      p = p * pl.reciprocal(jnp.sum(p, axis=-1, keepdims=True), approx=True)
      heads.append(jnp.einsum("bqk,bkd->bqd", p.astype(jnp.bfloat16), v,
                              preferred_element_type=jnp.float32))  # (Bt, S, hd)

    # ---- single full-D output projection (lane concat of head outputs) ----
    o = jnp.concatenate(heads, axis=-1).reshape(Bt * S, D)
    return jnp.dot(o.astype(jnp.bfloat16), wo_ref[layer],
                   preferred_element_type=jnp.float32) + bo_ref[layer]

  def layer_norm(y, layer, eps=1e-5):
    mu = jnp.mean(y, axis=-1, keepdims=True)
    c = y - mu
    var = jnp.mean(c * c, axis=-1, keepdims=True)
    return c * jax.lax.rsqrt(var + eps) * g_ref[layer] + be_ref[layer]

  h1 = layer_norm(x + mha(x, 0, banded=False), 0)    # intra-frame attn + norm1
  h2 = layer_norm(h1 + mha(h1, 1, banded=True), 1)   # windowed inter-frame attn + norm2
  o_ref[...] = h2.reshape(Bt, S, D).astype(o_ref.dtype)


# ----------------------------------------------------------------------------
# Wrapper
# ----------------------------------------------------------------------------
def _pick_batch_tile(B):
  """Largest batch tile that amortizes per-step overhead while keeping >= 2 grid
  steps when possible (so the 'parallel' batch axis can shard across 2 TensorCores)."""
  for bt in (8, 4, 2, 1):
    if B % bt == 0 and B // bt >= 2:
      return bt
  return B


def frame_attention_block(x, params, *, num_heads, temporal_window):
  """x: (B, S, D) f32; params: kernel-layout params from prepare_block_params()."""
  B, S, D = x.shape
  wqkv, bqkv, wo, bo, gamma, beta = params
  bt = _pick_batch_tile(B)

  kernel = functools.partial(_frame_attn_block_kernel,
                             num_heads=num_heads, window=int(temporal_window))
  inv3 = lambda b: (0, 0, 0)  # grid-invariant operands: fetched once, never re-DMA'd

  out = pl.pallas_call(
      kernel,
      out_shape=jax.ShapeDtypeStruct((B, S, D), x.dtype),
      grid_spec=pltpu.PrefetchScalarGridSpec(
          num_scalar_prefetch=0,
          grid=(B // bt,),
          in_specs=[
              pl.BlockSpec((bt, S, D), lambda b: (b, 0, 0)),   # x
              pl.BlockSpec((2, D, 3 * D), inv3),               # wqkv (bf16)
              pl.BlockSpec((2, 1, 3 * D), inv3),               # bqkv
              pl.BlockSpec((2, D, D), inv3),                   # wo (bf16)
              pl.BlockSpec((2, 1, D), inv3),                   # bo
              pl.BlockSpec((2, 1, D), inv3),                   # gamma
              pl.BlockSpec((2, 1, D), inv3),                   # beta
          ],
          out_specs=pl.BlockSpec((bt, S, D), lambda b: (b, 0, 0)),
      ),
      compiler_params=pltpu.CompilerParams(
          dimension_semantics=("parallel",),
          vmem_limit_bytes=32 * 1024 * 1024,
      ),
  )(x, wqkv, bqkv, wo, bo, gamma, beta)
  return out


# ----------------------------------------------------------------------------
# Deterministic parameter construction (torch layout) + one-time kernel-layout prep
# ----------------------------------------------------------------------------
def make_mha_params(key, dim, dtype=jnp.float32):
  # nn.MultiheadAttention: in_proj_weight (3D, D), in_proj_bias (3D,),
  #                        out_proj.weight (D, D), out_proj.bias (D,)
  k1, k2, k3, k4 = jax.random.split(key, 4)
  bound = 1.0 / math.sqrt(dim)
  in_proj_w = jax.random.uniform(k1, (3 * dim, dim), dtype, -bound, bound)
  in_proj_b = jax.random.uniform(k2, (3 * dim,), dtype, -bound, bound)
  out_proj_w = jax.random.uniform(k3, (dim, dim), dtype, -bound, bound)
  out_proj_b = jax.random.uniform(k4, (dim,), dtype, -bound, bound)
  return in_proj_w, in_proj_b, out_proj_w, out_proj_b


def make_layernorm_params(key, dim, dtype=jnp.float32):
  k1, k2 = jax.random.split(key)
  gamma = 1.0 + 0.1 * jax.random.normal(k1, (dim,), dtype)
  beta = 0.1 * jax.random.normal(k2, (dim,), dtype)
  return gamma, beta


def prepare_block_params(attn1, attn2, ln1, ln2, num_heads):
  """One-time conversion torch layout -> kernel layout (outside the per-call hot path).
  Weights are stored bf16 (single-pass MXU, half the DMA/VMEM); biases/norm params f32."""
  def prep_attn(in_proj_w, in_proj_b, out_proj_w, out_proj_b):
    D = out_proj_w.shape[0]
    hd = D // num_heads
    scale = 1.0 / math.sqrt(hd)
    # torch: qkv = x @ in_proj_w.T + in_proj_b.  Columns [0:D]=Q, [D:2D]=K, [2D:3D]=V,
    # head-major within each block, which matches the kernel's per-head lane slices.
    w = in_proj_w.T.astype(jnp.float32)              # (D, 3D)
    b = in_proj_b.reshape(1, 3 * D).astype(jnp.float32)
    # Fold the 1/sqrt(hd) attention scale into Q (weight AND bias) — exact vs torch,
    # which scales the full projected q (bias included).
    q_scale = jnp.concatenate(
        [jnp.full((D,), scale, jnp.float32), jnp.ones((2 * D,), jnp.float32)])
    wqkv = (w * q_scale[None, :]).astype(jnp.bfloat16)
    bqkv = b * q_scale[None, :]
    # out proj: concat_h(o_h) @ out_proj_w.T  (single full-D contraction in the kernel)
    wo = out_proj_w.T.astype(jnp.bfloat16)           # (D, D)
    bo = out_proj_b.reshape(1, D).astype(jnp.float32)
    return wqkv, bqkv, wo, bo

  p1 = prep_attn(*attn1)
  p2 = prep_attn(*attn2)
  wqkv, bqkv, wo, bo = tuple(jnp.stack([a, b]) for a, b in zip(p1, p2))
  gamma = jnp.stack([ln1[0].reshape(1, -1), ln2[0].reshape(1, -1)]).astype(jnp.float32)
  beta = jnp.stack([ln1[1].reshape(1, -1), ln2[1].reshape(1, -1)]).astype(jnp.float32)
  return wqkv, bqkv, wo, bo, gamma, beta


# ----------------------------------------------------------------------------
# Pure-JAX reference (torch layout / torch semantics)
# ----------------------------------------------------------------------------
def make_temporal_mask(seq_len, window, dtype=jnp.float32):
  idx = jnp.arange(seq_len)
  dist = jnp.abs(idx[:, None] - idx[None, :])
  return jnp.where(dist <= window, 0.0, NEG_INF).astype(dtype)


def _mha_ref(x, in_proj_w, in_proj_b, out_proj_w, out_proj_b, num_heads, mask=None):
  B, S, D = x.shape
  hd = D // num_heads
  qkv = x @ in_proj_w.T + in_proj_b
  q, k, v = qkv[..., :D], qkv[..., D:2 * D], qkv[..., 2 * D:]
  split = lambda t: t.reshape(B, S, num_heads, hd).transpose(0, 2, 1, 3)
  q, k, v = split(q), split(k), split(v)
  s = jnp.einsum("bhqd,bhkd->bhqk", q, k) / math.sqrt(hd)
  if mask is not None:
    s = s + mask
  p = jax.nn.softmax(s, axis=-1)
  o = jnp.einsum("bhqk,bhkd->bhqd", p, v)
  o = o.transpose(0, 2, 1, 3).reshape(B, S, D)
  return o @ out_proj_w.T + out_proj_b


def _layernorm_ref(x, gamma, beta, eps=1e-5):
  mu = x.mean(-1, keepdims=True)
  var = ((x - mu) ** 2).mean(-1, keepdims=True)
  return (x - mu) / jnp.sqrt(var + eps) * gamma + beta


def frame_attention_block_ref(x, attn1, attn2, ln1, ln2, num_heads, window):
  _, S, _ = x.shape
  mask = make_temporal_mask(S, window, jnp.float32)
  h = _layernorm_ref(x + _mha_ref(x, *attn1, num_heads), *ln1)
  h = _layernorm_ref(h + _mha_ref(h, *attn2, num_heads, mask=mask), *ln2)
  return h


# ----------------------------------------------------------------------------
if __name__ == "__main__":
  key = jax.random.PRNGKey(0)
  kx, k1, k2, k3, k4 = jax.random.split(key, 5)

  # batch=2, seq=8, dim=32, num_heads=4 (head_dim=8), temporal_window=2
  B, S, D, H, W = 2, 8, 32, 4, 2
  x = jax.random.normal(kx, (B, S, D), jnp.float32)

  attn1 = make_mha_params(k1, D)
  attn2 = make_mha_params(k2, D)
  ln1 = make_layernorm_params(k3, D)
  ln2 = make_layernorm_params(k4, D)

  # One-time parameter re-layout (not part of the per-forward hot path).
  params = prepare_block_params(attn1, attn2, ln1, ln2, H)

  out = frame_attention_block(x, params, num_heads=H, temporal_window=W)
  out = jax.block_until_ready(out)

  ref = frame_attention_block_ref(x, attn1, attn2, ln1, ln2, H, W)
  assert out.shape == (B, S, D)
  # The kernel deliberately uses bf16 MXU operands (f32 accumulation) and the approx
  # EUP reciprocal for the softmax denominator, per the perf review; the f32 XLA
  # reference groups/rounds differently, so allow a small numerical tolerance
  # (structural bugs produce O(0.1-1) errors and are still caught).
  err = float(jnp.max(jnp.abs(out - ref)))
  assert jnp.allclose(out, ref, atol=3e-2, rtol=3e-2), err
  print("KERNEL_OK")
</pallas_src>

<mosaic_0001>
module attributes {stable_mosaic.version = 11 : i64} {
  func.func @_frame_attn_block_kernel(%arg0: i32, %arg1: memref<1x8x32xf32, #tpu.memory_space<vmem>>, %arg2: memref<2x32x96xbf16, #tpu.memory_space<vmem>>, %arg3: memref<2x1x96xf32, #tpu.memory_space<vmem>>, %arg4: memref<2x32x32xbf16, #tpu.memory_space<vmem>>, %arg5: memref<2x1x32xf32, #tpu.memory_space<vmem>>, %arg6: memref<2x1x32xf32, #tpu.memory_space<vmem>>, %arg7: memref<2x1x32xf32, #tpu.memory_space<vmem>>, %arg8: memref<1x8x32xf32, #tpu.memory_space<vmem>>) attributes {dimension_semantics = [#tpu.dimension_semantics<parallel>], iteration_bounds = array<i64: 2>, scalar_prefetch = 0 : i64, scratch_operands = 0 : i64, tpu.core_type = #tpu.core_type<tc>, window_params = [{transform_indices = @transform_0, window_bounds = array<i64: 1, 8, 32>}, {pipeline_mode = #tpu.pipeline_mode<synchronous>, transform_indices = @transform_1, window_bounds = array<i64: 2, 32, 96>}, {pipeline_mode = #tpu.pipeline_mode<synchronous>, transform_indices = @transform_2, window_bounds = array<i64: 2, 1, 96>}, {pipeline_mode = #tpu.pipeline_mode<synchronous>, transform_indices = @transform_3, window_bounds = array<i64: 2, 32, 32>}, {pipeline_mode = #tpu.pipeline_mode<synchronous>, transform_indices = @transform_4, window_bounds = array<i64: 2, 1, 32>}, {pipeline_mode = #tpu.pipeline_mode<synchronous>, transform_indices = @transform_5, window_bounds = array<i64: 2, 1, 32>}, {pipeline_mode = #tpu.pipeline_mode<synchronous>, transform_indices = @transform_6, window_bounds = array<i64: 2, 1, 32>}, {transform_indices = @transform_7, window_bounds = array<i64: 1, 8, 32>}]} {
    %c0 = arith.constant 0 : index
    %c0_0 = arith.constant 0 : index
    %c0_1 = arith.constant 0 : index
    %0 = vector.load %arg1[%c0, %c0_0, %c0_1] : memref<1x8x32xf32, #tpu.memory_space<vmem>>, vector<1x8x32xf32>
    %1 = vector.shape_cast %0 : vector<1x8x32xf32> to vector<8x32xf32>
    %2 = arith.truncf %1 : vector<8x32xf32> to vector<8x32xbf16>
    %c0_2 = arith.constant 0 : index
    %c0_3 = arith.constant 0 : index
    %c0_4 = arith.constant 0 : index
    %3 = vector.load %arg2[%c0_2, %c0_3, %c0_4] : memref<2x32x96xbf16, #tpu.memory_space<vmem>>, vector<1x32x96xbf16>
    %4 = vector.shape_cast %3 : vector<1x32x96xbf16> to vector<32x96xbf16>
    %cst = arith.constant dense<0.000000e+00> : vector<8x96xf32>
    %5 = tpu.matmul %2, %4, %cst {dimension_numbers = #tpu.dot_dimension_numbers<[1], [0], [0], [1], [0, 0, 1, 1], [], []>} : vector<8x32xbf16>, vector<32x96xbf16>, vector<8x96xf32> -> vector<8x96xf32>
    %c0_5 = arith.constant 0 : index
    %c0_6 = arith.constant 0 : index
    %c0_7 = arith.constant 0 : index
    %6 = vector.load %arg3[%c0_5, %c0_6, %c0_7] : memref<2x1x96xf32, #tpu.memory_space<vmem>>, vector<1x1x96xf32>
    %7 = vector.shape_cast %6 : vector<1x1x96xf32> to vector<1x96xf32>
    %8 = vector.broadcast %7 : vector<1x96xf32> to vector<8x96xf32>
    %9 = arith.addf %5, %8 : vector<8x96xf32>
    %10 = vector.shape_cast %9 : vector<8x96xf32> to vector<1x8x96xf32>
    %11 = vector.extract_strided_slice %10 {offsets = [0, 0, 0], sizes = [1, 8, 8], strides = [1, 1, 1]} : vector<1x8x96xf32> to vector<1x8x8xf32>
    %12 = arith.truncf %11 : vector<1x8x8xf32> to vector<1x8x8xbf16>
    %13 = vector.extract_strided_slice %10 {offsets = [0, 0, 32], sizes = [1, 8, 8], strides = [1, 1, 1]} : vector<1x8x96xf32> to vector<1x8x8xf32>
    %14 = arith.truncf %13 : vector<1x8x8xf32> to vector<1x8x8xbf16>
    %15 = vector.extract_strided_slice %10 {offsets = [0, 0, 64], sizes = [1, 8, 8], strides = [1, 1, 1]} : vector<1x8x96xf32> to vector<1x8x8xf32>
    %16 = arith.truncf %15 : vector<1x8x8xf32> to vector<1x8x8xbf16>
    "tpu.trace_start"() <{level = 10 : i32, message = "bqd,bkd->bqk"}> : () -> ()
    %cst_8 = arith.constant dense<0.000000e+00> : vector<1x8x8xf32>
    %17 = tpu.matmul %12, %14, %cst_8 {dimension_numbers = #tpu.dot_dimension_numbers<[2], [2], [1], [1], [0, 0, 0, 1, 1, 1], [0], [0]>} : vector<1x8x8xbf16>, vector<1x8x8xbf16>, vector<1x8x8xf32> -> vector<1x8x8xf32>
    "tpu.trace_stop"() : () -> ()
    %cst_9 = arith.constant dense<0xFF800000> : vector<1x8xf32>
    %18 = vector.multi_reduction <maximumf>, %17, %cst_9 [2] : vector<1x8x8xf32> to vector<1x8xf32>
    %19 = vector.shape_cast %18 : vector<1x8xf32> to vector<1x8x1xf32>
    %20 = vector.broadcast %19 : vector<1x8x1xf32> to vector<1x8x8xf32>
    %21 = arith.subf %17, %20 : vector<1x8x8xf32>
    %22 = math.exp %21 : vector<1x8x8xf32>
    %cst_10 = arith.constant dense<0.000000e+00> : vector<1x8xf32>
    %23 = vector.multi_reduction <add>, %22, %cst_10 [2] : vector<1x8x8xf32> to vector<1x8xf32>
    %24 = vector.shape_cast %23 : vector<1x8xf32> to vector<1x8x1xf32>
    %25 = tpu.reciprocal %24 {approx = true} : vector<1x8x1xf32> -> vector<1x8x1xf32>
    %26 = vector.broadcast %25 : vector<1x8x1xf32> to vector<1x8x8xf32>
    %27 = arith.mulf %22, %26 : vector<1x8x8xf32>
    %28 = arith.truncf %27 : vector<1x8x8xf32> to vector<1x8x8xbf16>
    "tpu.trace_start"() <{level = 10 : i32, message = "bqk,bkd->bqd"}> : () -> ()
    %cst_11 = arith.constant dense<0.000000e+00> : vector<1x8x8xf32>
    %29 = tpu.matmul %28, %16, %cst_11 {dimension_numbers = #tpu.dot_dimension_numbers<[2], [1], [1], [2], [0, 0, 0, 1, 1, 2], [0], [0]>} : vector<1x8x8xbf16>, vector<1x8x8xbf16>, vector<1x8x8xf32> -> vector<1x8x8xf32>
    "tpu.trace_stop"() : () -> ()
    %30 = vector.extract_strided_slice %10 {offsets = [0, 0, 8], sizes = [1, 8, 8], strides = [1, 1, 1]} : vector<1x8x96xf32> to vector<1x8x8xf32>
    %31 = arith.truncf %30 : vector<1x8x8xf32> to vector<1x8x8xbf16>
    %32 = vector.extract_strided_slice %10 {offsets = [0, 0, 40], sizes = [1, 8, 8], strides = [1, 1, 1]} : vector<1x8x96xf32> to vector<1x8x8xf32>
    %33 = arith.truncf %32 : vector<1x8x8xf32> to vector<1x8x8xbf16>
    %34 = vector.extract_strided_slice %10 {offsets = [0, 0, 72], sizes = [1, 8, 8], strides = [1, 1, 1]} : vector<1x8x96xf32> to vector<1x8x8xf32>
    %35 = arith.truncf %34 : vector<1x8x8xf32> to vector<1x8x8xbf16>
    "tpu.trace_start"() <{level = 10 : i32, message = "bqd,bkd->bqk"}> : () -> ()
    %cst_12 = arith.constant dense<0.000000e+00> : vector<1x8x8xf32>
    %36 = tpu.matmul %31, %33, %cst_12 {dimension_numbers = #tpu.dot_dimension_numbers<[2], [2], [1], [1], [0, 0, 0, 1, 1, 1], [0], [0]>} : vector<1x8x8xbf16>, vector<1x8x8xbf16>, vector<1x8x8xf32> -> vector<1x8x8xf32>
    "tpu.trace_stop"() : () -> ()
    %cst_13 = arith.constant dense<0xFF800000> : vector<1x8xf32>
    %37 = vector.multi_reduction <maximumf>, %36, %cst_13 [2] : vector<1x8x8xf32> to vector<1x8xf32>
    %38 = vector.shape_cast %37 : vector<1x8xf32> to vector<1x8x1xf32>
    %39 = vector.broadcast %38 : vector<1x8x1xf32> to vector<1x8x8xf32>
    %40 = arith.subf %36, %39 : vector<1x8x8xf32>
    %41 = math.exp %40 : vector<1x8x8xf32>
    %cst_14 = arith.constant dense<0.000000e+00> : vector<1x8xf32>
    %42 = vector.multi_reduction <add>, %41, %cst_14 [2] : vector<1x8x8xf32> to vector<1x8xf32>
    %43 = vector.shape_cast %42 : vector<1x8xf32> to vector<1x8x1xf32>
    %44 = tpu.reciprocal %43 {approx = true} : vector<1x8x1xf32> -> vector<1x8x1xf32>
    %45 = vector.broadcast %44 : vector<1x8x1xf32> to vector<1x8x8xf32>
    %46 = arith.mulf %41, %45 : vector<1x8x8xf32>
    %47 = arith.truncf %46 : vector<1x8x8xf32> to vector<1x8x8xbf16>
    "tpu.trace_start"() <{level = 10 : i32, message = "bqk,bkd->bqd"}> : () -> ()
    %cst_15 = arith.constant dense<0.000000e+00> : vector<1x8x8xf32>
    %48 = tpu.matmul %47, %35, %cst_15 {dimension_numbers = #tpu.dot_dimension_numbers<[2], [1], [1], [2], [0, 0, 0, 1, 1, 2], [0], [0]>} : vector<1x8x8xbf16>, vector<1x8x8xbf16>, vector<1x8x8xf32> -> vector<1x8x8xf32>
    "tpu.trace_stop"() : () -> ()
    %49 = vector.extract_strided_slice %10 {offsets = [0, 0, 16], sizes = [1, 8, 8], strides = [1, 1, 1]} : vector<1x8x96xf32> to vector<1x8x8xf32>
    %50 = arith.truncf %49 : vector<1x8x8xf32> to vector<1x8x8xbf16>
    %51 = vector.extract_strided_slice %10 {offsets = [0, 0, 48], sizes = [1, 8, 8], strides = [1, 1, 1]} : vector<1x8x96xf32> to vector<1x8x8xf32>
    %52 = arith.truncf %51 : vector<1x8x8xf32> to vector<1x8x8xbf16>
    %53 = vector.extract_strided_slice %10 {offsets = [0, 0, 80], sizes = [1, 8, 8], strides = [1, 1, 1]} : vector<1x8x96xf32> to vector<1x8x8xf32>
    %54 = arith.truncf %53 : vector<1x8x8xf32> to vector<1x8x8xbf16>
    "tpu.trace_start"() <{level = 10 : i32, message = "bqd,bkd->bqk"}> : () -> ()
    %cst_16 = arith.constant dense<0.000000e+00> : vector<1x8x8xf32>
    %55 = tpu.matmul %50, %52, %cst_16 {dimension_numbers = #tpu.dot_dimension_numbers<[2], [2], [1], [1], [0, 0, 0, 1, 1, 1], [0], [0]>} : vector<1x8x8xbf16>, vector<1x8x8xbf16>, vector<1x8x8xf32> -> vector<1x8x8xf32>
    "tpu.trace_stop"() : () -> ()
    %cst_17 = arith.constant dense<0xFF800000> : vector<1x8xf32>
    %56 = vector.multi_reduction <maximumf>, %55, %cst_17 [2] : vector<1x8x8xf32> to vector<1x8xf32>
    %57 = vector.shape_cast %56 : vector<1x8xf32> to vector<1x8x1xf32>
    %58 = vector.broadcast %57 : vector<1x8x1xf32> to vector<1x8x8xf32>
    %59 = arith.subf %55, %58 : vector<1x8x8xf32>
    %60 = math.exp %59 : vector<1x8x8xf32>
    %cst_18 = arith.constant dense<0.000000e+00> : vector<1x8xf32>
    %61 = vector.multi_reduction <add>, %60, %cst_18 [2] : vector<1x8x8xf32> to vector<1x8xf32>
    %62 = vector.shape_cast %61 : vector<1x8xf32> to vector<1x8x1xf32>
    %63 = tpu.reciprocal %62 {approx = true} : vector<1x8x1xf32> -> vector<1x8x1xf32>
    %64 = vector.broadcast %63 : vector<1x8x1xf32> to vector<1x8x8xf32>
    %65 = arith.mulf %60, %64 : vector<1x8x8xf32>
    %66 = arith.truncf %65 : vector<1x8x8xf32> to vector<1x8x8xbf16>
    "tpu.trace_start"() <{level = 10 : i32, message = "bqk,bkd->bqd"}> : () -> ()
    %cst_19 = arith.constant dense<0.000000e+00> : vector<1x8x8xf32>
    %67 = tpu.matmul %66, %54, %cst_19 {dimension_numbers = #tpu.dot_dimension_numbers<[2], [1], [1], [2], [0, 0, 0, 1, 1, 2], [0], [0]>} : vector<1x8x8xbf16>, vector<1x8x8xbf16>, vector<1x8x8xf32> -> vector<1x8x8xf32>
    "tpu.trace_stop"() : () -> ()
    %68 = vector.extract_strided_slice %10 {offsets = [0, 0, 24], sizes = [1, 8, 8], strides = [1, 1, 1]} : vector<1x8x96xf32> to vector<1x8x8xf32>
    %69 = arith.truncf %68 : vector<1x8x8xf32> to vector<1x8x8xbf16>
    %70 = vector.extract_strided_slice %10 {offsets = [0, 0, 56], sizes = [1, 8, 8], strides = [1, 1, 1]} : vector<1x8x96xf32> to vector<1x8x8xf32>
    %71 = arith.truncf %70 : vector<1x8x8xf32> to vector<1x8x8xbf16>
    %72 = vector.extract_strided_slice %10 {offsets = [0, 0, 88], sizes = [1, 8, 8], strides = [1, 1, 1]} : vector<1x8x96xf32> to vector<1x8x8xf32>
    %73 = arith.truncf %72 : vector<1x8x8xf32> to vector<1x8x8xbf16>
    "tpu.trace_start"() <{level = 10 : i32, message = "bqd,bkd->bqk"}> : () -> ()
    %cst_20 = arith.constant dense<0.000000e+00> : vector<1x8x8xf32>
    %74 = tpu.matmul %69, %71, %cst_20 {dimension_numbers = #tpu.dot_dimension_numbers<[2], [2], [1], [1], [0, 0, 0, 1, 1, 1], [0], [0]>} : vector<1x8x8xbf16>, vector<1x8x8xbf16>, vector<1x8x8xf32> -> vector<1x8x8xf32>
    "tpu.trace_stop"() : () -> ()
    %cst_21 = arith.constant dense<0xFF800000> : vector<1x8xf32>
    %75 = vector.multi_reduction <maximumf>, %74, %cst_21 [2] : vector<1x8x8xf32> to vector<1x8xf32>
    %76 = vector.shape_cast %75 : vector<1x8xf32> to vector<1x8x1xf32>
    %77 = vector.broadcast %76 : vector<1x8x1xf32> to vector<1x8x8xf32>
    %78 = arith.subf %74, %77 : vector<1x8x8xf32>
    %79 = math.exp %78 : vector<1x8x8xf32>
    %cst_22 = arith.constant dense<0.000000e+00> : vector<1x8xf32>
    %80 = vector.multi_reduction <add>, %79, %cst_22 [2] : vector<1x8x8xf32> to vector<1x8xf32>
    %81 = vector.shape_cast %80 : vector<1x8xf32> to vector<1x8x1xf32>
    %82 = tpu.reciprocal %81 {approx = true} : vector<1x8x1xf32> -> vector<1x8x1xf32>
    %83 = vector.broadcast %82 : vector<1x8x1xf32> to vector<1x8x8xf32>
    %84 = arith.mulf %79, %83 : vector<1x8x8xf32>
    %85 = arith.truncf %84 : vector<1x8x8xf32> to vector<1x8x8xbf16>
    "tpu.trace_start"() <{level = 10 : i32, message = "bqk,bkd->bqd"}> : () -> ()
    %cst_23 = arith.constant dense<0.000000e+00> : vector<1x8x8xf32>
    %86 = tpu.matmul %85, %73, %cst_23 {dimension_numbers = #tpu.dot_dimension_numbers<[2], [1], [1], [2], [0, 0, 0, 1, 1, 2], [0], [0]>} : vector<1x8x8xbf16>, vector<1x8x8xbf16>, vector<1x8x8xf32> -> vector<1x8x8xf32>
    "tpu.trace_stop"() : () -> ()
    %87 = tpu.concatenate %29, %48, %67, %86 in 2 : vector<1x8x8xf32>, vector<1x8x8xf32>, vector<1x8x8xf32>, vector<1x8x8xf32> -> vector<1x8x32xf32>
    %88 = vector.shape_cast %87 : vector<1x8x32xf32> to vector<8x32xf32>
    %89 = arith.truncf %88 : vector<8x32xf32> to vector<8x32xbf16>
    %c0_24 = arith.constant 0 : index
    %c0_25 = arith.constant 0 : index
    %c0_26 = arith.constant 0 : index
    %90 = vector.load %arg4[%c0_24, %c0_25, %c0_26] : memref<2x32x32xbf16, #tpu.memory_space<vmem>>, vector<1x32x32xbf16>
    %91 = vector.shape_cast %90 : vector<1x32x32xbf16> to vector<32x32xbf16>
    %cst_27 = arith.constant dense<0.000000e+00> : vector<8x32xf32>
    %92 = tpu.matmul %89, %91, %cst_27 {dimension_numbers = #tpu.dot_dimension_numbers<[1], [0], [0], [1], [0, 0, 1, 1], [], []>} : vector<8x32xbf16>, vector<32x32xbf16>, vector<8x32xf32> -> vector<8x32xf32>
    %c0_28 = arith.constant 0 : index
    %c0_29 = arith.constant 0 : index
    %c0_30 = arith.constant 0 : index
    %93 = vector.load %arg5[%c0_28, %c0_29, %c0_30] : memref<2x1x32xf32, #tpu.memory_space<vmem>>, vector<1x1x32xf32>
    %94 = vector.shape_cast %93 : vector<1x1x32xf32> to vector<1x32xf32>
    %95 = vector.broadcast %94 : vector<1x32xf32> to vector<8x32xf32>
    %96 = arith.addf %92, %95 : vector<8x32xf32>
    %97 = arith.addf %1, %96 : vector<8x32xf32>
    %cst_31 = arith.constant dense<0.000000e+00> : vector<8xf32>
    %98 = vector.multi_reduction <add>, %97, %cst_31 [1] : vector<8x32xf32> to vector<8xf32>
    %99 = vector.shape_cast %98 : vector<8xf32> to vector<8x1xf32>
    %cst_32 = arith.constant 3.200000e+01 : f32
    %100 = vector.broadcast %cst_32 : f32 to vector<8x1xf32>
    %101 = arith.divf %99, %100 : vector<8x1xf32>
    %102 = vector.broadcast %101 : vector<8x1xf32> to vector<8x32xf32>
    %103 = arith.subf %97, %102 : vector<8x32xf32>
    %104 = arith.mulf %103, %103 : vector<8x32xf32>
    %cst_33 = arith.constant dense<0.000000e+00> : vector<8xf32>
    %105 = vector.multi_reduction <add>, %104, %cst_33 [1] : vector<8x32xf32> to vector<8xf32>
    %106 = vector.shape_cast %105 : vector<8xf32> to vector<8x1xf32>
    %cst_34 = arith.constant 3.200000e+01 : f32
    %107 = vector.broadcast %cst_34 : f32 to vector<8x1xf32>
    %108 = arith.divf %106, %107 : vector<8x1xf32>
    %cst_35 = arith.constant 9.99999974E-6 : f32
    %109 = vector.broadcast %cst_35 : f32 to vector<8x1xf32>
    %110 = arith.addf %108, %109 : vector<8x1xf32>
    %111 = math.rsqrt %110 : vector<8x1xf32>
    %112 = vector.broadcast %111 : vector<8x1xf32> to vector<8x32xf32>
    %113 = arith.mulf %103, %112 : vector<8x32xf32>
    %c0_36 = arith.constant 0 : index
    %c0_37 = arith.constant 0 : index
    %c0_38 = arith.constant 0 : index
    %114 = vector.load %arg6[%c0_36, %c0_37, %c0_38] : memref<2x1x32xf32, #tpu.memory_space<vmem>>, vector<1x1x32xf32>
    %115 = vector.shape_cast %114 : vector<1x1x32xf32> to vector<1x32xf32>
    %116 = vector.broadcast %115 : vector<1x32xf32> to vector<8x32xf32>
    %117 = arith.mulf %113, %116 : vector<8x32xf32>
    %c0_39 = arith.constant 0 : index
    %c0_40 = arith.constant 0 : index
    %c0_41 = arith.constant 0 : index
    %118 = vector.load %arg7[%c0_39, %c0_40, %c0_41] : memref<2x1x32xf32, #tpu.memory_space<vmem>>, vector<1x1x32xf32>
    %119 = vector.shape_cast %118 : vector<1x1x32xf32> to vector<1x32xf32>
    %120 = vector.broadcast %119 : vector<1x32xf32> to vector<8x32xf32>
    %121 = arith.addf %117, %120 : vector<8x32xf32>
    %122 = arith.truncf %121 : vector<8x32xf32> to vector<8x32xbf16>
    %c1 = arith.constant 1 : index
    %c0_42 = arith.constant 0 : index
    %c0_43 = arith.constant 0 : index
    %123 = vector.load %arg2[%c1, %c0_42, %c0_43] : memref<2x32x96xbf16, #tpu.memory_space<vmem>>, vector<1x32x96xbf16>
    %124 = vector.shape_cast %123 : vector<1x32x96xbf16> to vector<32x96xbf16>
    %cst_44 = arith.constant dense<0.000000e+00> : vector<8x96xf32>
    %125 = tpu.matmul %122, %124, %cst_44 {dimension_numbers = #tpu.dot_dimension_numbers<[1], [0], [0], [1], [0, 0, 1, 1], [], []>} : vector<8x32xbf16>, vector<32x96xbf16>, vector<8x96xf32> -> vector<8x96xf32>
    %c1_45 = arith.constant 1 : index
    %c0_46 = arith.constant 0 : index
    %c0_47 = arith.constant 0 : index
    %126 = vector.load %arg3[%c1_45, %c0_46, %c0_47] : memref<2x1x96xf32, #tpu.memory_space<vmem>>, vector<1x1x96xf32>
    %127 = vector.shape_cast %126 : vector<1x1x96xf32> to vector<1x96xf32>
    %128 = vector.broadcast %127 : vector<1x96xf32> to vector<8x96xf32>
    %129 = arith.addf %125, %128 : vector<8x96xf32>
    %130 = vector.shape_cast %129 : vector<8x96xf32> to vector<1x8x96xf32>
    %131 = tpu.iota {dimensions = array<i32: 1>} : vector<1x8x8xi32>
    %132 = tpu.iota {dimensions = array<i32: 2>} : vector<1x8x8xi32>
    %133 = arith.subi %131, %132 : vector<1x8x8xi32>
    %134 = math.absi %133 : vector<1x8x8xi32>
    %c2_i32 = arith.constant 2 : i32
    %135 = vector.broadcast %c2_i32 : i32 to vector<1x8x8xi32>
    %136 = arith.cmpi sle, %134, %135 : vector<1x8x8xi32>
    %137 = vector.extract_strided_slice %130 {offsets = [0, 0, 0], sizes = [1, 8, 8], strides = [1, 1, 1]} : vector<1x8x96xf32> to vector<1x8x8xf32>
    %138 = arith.truncf %137 : vector<1x8x8xf32> to vector<1x8x8xbf16>
    %139 = vector.extract_strided_slice %130 {offsets = [0, 0, 32], sizes = [1, 8, 8], strides = [1, 1, 1]} : vector<1x8x96xf32> to vector<1x8x8xf32>
    %140 = arith.truncf %139 : vector<1x8x8xf32> to vector<1x8x8xbf16>
    %141 = vector.extract_strided_slice %130 {offsets = [0, 0, 64], sizes = [1, 8, 8], strides = [1, 1, 1]} : vector<1x8x96xf32> to vector<1x8x8xf32>
    %142 = arith.truncf %141 : vector<1x8x8xf32> to vector<1x8x8xbf16>
    "tpu.trace_start"() <{level = 10 : i32, message = "bqd,bkd->bqk"}> : () -> ()
    %cst_48 = arith.constant dense<0.000000e+00> : vector<1x8x8xf32>
    %143 = tpu.matmul %138, %140, %cst_48 {dimension_numbers = #tpu.dot_dimension_numbers<[2], [2], [1], [1], [0, 0, 0, 1, 1, 1], [0], [0]>} : vector<1x8x8xbf16>, vector<1x8x8xbf16>, vector<1x8x8xf32> -> vector<1x8x8xf32>
    %cst_49 = arith.constant -1.000000e+30 : f32
    "tpu.trace_stop"() : () -> ()
    %144 = vector.broadcast %cst_49 : f32 to vector<1x8x8xf32>
    %145 = arith.select %136, %143, %144 : vector<1x8x8xi1>, vector<1x8x8xf32>
    %cst_50 = arith.constant dense<0xFF800000> : vector<1x8xf32>
    %146 = vector.multi_reduction <maximumf>, %145, %cst_50 [2] : vector<1x8x8xf32> to vector<1x8xf32>
    %147 = vector.shape_cast %146 : vector<1x8xf32> to vector<1x8x1xf32>
    %148 = vector.broadcast %147 : vector<1x8x1xf32> to vector<1x8x8xf32>
    %149 = arith.subf %145, %148 : vector<1x8x8xf32>
    %150 = math.exp %149 : vector<1x8x8xf32>
    %cst_51 = arith.constant dense<0.000000e+00> : vector<1x8xf32>
    %151 = vector.multi_reduction <add>, %150, %cst_51 [2] : vector<1x8x8xf32> to vector<1x8xf32>
    %152 = vector.shape_cast %151 : vector<1x8xf32> to vector<1x8x1xf32>
    %153 = tpu.reciprocal %152 {approx = true} : vector<1x8x1xf32> -> vector<1x8x1xf32>
    %154 = vector.broadcast %153 : vector<1x8x1xf32> to vector<1x8x8xf32>
    %155 = arith.mulf %150, %154 : vector<1x8x8xf32>
    %156 = arith.truncf %155 : vector<1x8x8xf32> to vector<1x8x8xbf16>
    "tpu.trace_start"() <{level = 10 : i32, message = "bqk,bkd->bqd"}> : () -> ()
    %cst_52 = arith.constant dense<0.000000e+00> : vector<1x8x8xf32>
    %157 = tpu.matmul %156, %142, %cst_52 {dimension_numbers = #tpu.dot_dimension_numbers<[2], [1], [1], [2], [0, 0, 0, 1, 1, 2], [0], [0]>} : vector<1x8x8xbf16>, vector<1x8x8xbf16>, vector<1x8x8xf32> -> vector<1x8x8xf32>
    "tpu.trace_stop"() : () -> ()
    %158 = vector.extract_strided_slice %130 {offsets = [0, 0, 8], sizes = [1, 8, 8], strides = [1, 1, 1]} : vector<1x8x96xf32> to vector<1x8x8xf32>
    %159 = arith.truncf %158 : vector<1x8x8xf32> to vector<1x8x8xbf16>
    %160 = vector.extract_strided_slice %130 {offsets = [0, 0, 40], sizes = [1, 8, 8], strides = [1, 1, 1]} : vector<1x8x96xf32> to vector<1x8x8xf32>
    %161 = arith.truncf %160 : vector<1x8x8xf32> to vector<1x8x8xbf16>
    %162 = vector.extract_strided_slice %130 {offsets = [0, 0, 72], sizes = [1, 8, 8], strides = [1, 1, 1]} : vector<1x8x96xf32> to vector<1x8x8xf32>
    %163 = arith.truncf %162 : vector<1x8x8xf32> to vector<1x8x8xbf16>
    "tpu.trace_start"() <{level = 10 : i32, message = "bqd,bkd->bqk"}> : () -> ()
    %cst_53 = arith.constant dense<0.000000e+00> : vector<1x8x8xf32>
    %164 = tpu.matmul %159, %161, %cst_53 {dimension_numbers = #tpu.dot_dimension_numbers<[2], [2], [1], [1], [0, 0, 0, 1, 1, 1], [0], [0]>} : vector<1x8x8xbf16>, vector<1x8x8xbf16>, vector<1x8x8xf32> -> vector<1x8x8xf32>
    %cst_54 = arith.constant -1.000000e+30 : f32
    "tpu.trace_stop"() : () -> ()
    %165 = vector.broadcast %cst_54 : f32 to vector<1x8x8xf32>
    %166 = arith.select %136, %164, %165 : vector<1x8x8xi1>, vector<1x8x8xf32>
    %cst_55 = arith.constant dense<0xFF800000> : vector<1x8xf32>
    %167 = vector.multi_reduction <maximumf>, %166, %cst_55 [2] : vector<1x8x8xf32> to vector<1x8xf32>
    %168 = vector.shape_cast %167 : vector<1x8xf32> to vector<1x8x1xf32>
    %169 = vector.broadcast %168 : vector<1x8x1xf32> to vector<1x8x8xf32>
    %170 = arith.subf %166, %169 : vector<1x8x8xf32>
    %171 = math.exp %170 : vector<1x8x8xf32>
    %cst_56 = arith.constant dense<0.000000e+00> : vector<1x8xf32>
    %172 = vector.multi_reduction <add>, %171, %cst_56 [2] : vector<1x8x8xf32> to vector<1x8xf32>
    %173 = vector.shape_cast %172 : vector<1x8xf32> to vector<1x8x1xf32>
    %174 = tpu.reciprocal %173 {approx = true} : vector<1x8x1xf32> -> vector<1x8x1xf32>
    %175 = vector.broadcast %174 : vector<1x8x1xf32> to vector<1x8x8xf32>
    %176 = arith.mulf %171, %175 : vector<1x8x8xf32>
    %177 = arith.truncf %176 : vector<1x8x8xf32> to vector<1x8x8xbf16>
    "tpu.trace_start"() <{level = 10 : i32, message = "bqk,bkd->bqd"}> : () -> ()
    %cst_57 = arith.constant dense<0.000000e+00> : vector<1x8x8xf32>
    %178 = tpu.matmul %177, %163, %cst_57 {dimension_numbers = #tpu.dot_dimension_numbers<[2], [1], [1], [2], [0, 0, 0, 1, 1, 2], [0], [0]>} : vector<1x8x8xbf16>, vector<1x8x8xbf16>, vector<1x8x8xf32> -> vector<1x8x8xf32>
    "tpu.trace_stop"() : () -> ()
    %179 = vector.extract_strided_slice %130 {offsets = [0, 0, 16], sizes = [1, 8, 8], strides = [1, 1, 1]} : vector<1x8x96xf32> to vector<1x8x8xf32>
    %180 = arith.truncf %179 : vector<1x8x8xf32> to vector<1x8x8xbf16>
    %181 = vector.extract_strided_slice %130 {offsets = [0, 0, 48], sizes = [1, 8, 8], strides = [1, 1, 1]} : vector<1x8x96xf32> to vector<1x8x8xf32>
    %182 = arith.truncf %181 : vector<1x8x8xf32> to vector<1x8x8xbf16>
    %183 = vector.extract_strided_slice %130 {offsets = [0, 0, 80], sizes = [1, 8, 8], strides = [1, 1, 1]} : vector<1x8x96xf32> to vector<1x8x8xf32>
    %184 = arith.truncf %183 : vector<1x8x8xf32> to vector<1x8x8xbf16>
    "tpu.trace_start"() <{level = 10 : i32, message = "bqd,bkd->bqk"}> : () -> ()
    %cst_58 = arith.constant dense<0.000000e+00> : vector<1x8x8xf32>
    %185 = tpu.matmul %180, %182, %cst_58 {dimension_numbers = #tpu.dot_dimension_numbers<[2], [2], [1], [1], [0, 0, 0, 1, 1, 1], [0], [0]>} : vector<1x8x8xbf16>, vector<1x8x8xbf16>, vector<1x8x8xf32> -> vector<1x8x8xf32>
    %cst_59 = arith.constant -1.000000e+30 : f32
    "tpu.trace_stop"() : () -> ()
    %186 = vector.broadcast %cst_59 : f32 to vector<1x8x8xf32>
    %187 = arith.select %136, %185, %186 : vector<1x8x8xi1>, vector<1x8x8xf32>
    %cst_60 = arith.constant dense<0xFF800000> : vector<1x8xf32>
    %188 = vector.multi_reduction <maximumf>, %187, %cst_60 [2] : vector<1x8x8xf32> to vector<1x8xf32>
    %189 = vector.shape_cast %188 : vector<1x8xf32> to vector<1x8x1xf32>
    %190 = vector.broadcast %189 : vector<1x8x1xf32> to vector<1x8x8xf32>
    %191 = arith.subf %187, %190 : vector<1x8x8xf32>
    %192 = math.exp %191 : vector<1x8x8xf32>
    %cst_61 = arith.constant dense<0.000000e+00> : vector<1x8xf32>
    %193 = vector.multi_reduction <add>, %192, %cst_61 [2] : vector<1x8x8xf32> to vector<1x8xf32>
    %194 = vector.shape_cast %193 : vector<1x8xf32> to vector<1x8x1xf32>
    %195 = tpu.reciprocal %194 {approx = true} : vector<1x8x1xf32> -> vector<1x8x1xf32>
    %196 = vector.broadcast %195 : vector<1x8x1xf32> to vector<1x8x8xf32>
    %197 = arith.mulf %192, %196 : vector<1x8x8xf32>
    %198 = arith.truncf %197 : vector<1x8x8xf32> to vector<1x8x8xbf16>
    "tpu.trace_start"() <{level = 10 : i32, message = "bqk,bkd->bqd"}> : () -> ()
    %cst_62 = arith.constant dense<0.000000e+00> : vector<1x8x8xf32>
    %199 = tpu.matmul %198, %184, %cst_62 {dimension_numbers = #tpu.dot_dimension_numbers<[2], [1], [1], [2], [0, 0, 0, 1, 1, 2], [0], [0]>} : vector<1x8x8xbf16>, vector<1x8x8xbf16>, vector<1x8x8xf32> -> vector<1x8x8xf32>
    "tpu.trace_stop"() : () -> ()
    %200 = vector.extract_strided_slice %130 {offsets = [0, 0, 24], sizes = [1, 8, 8], strides = [1, 1, 1]} : vector<1x8x96xf32> to vector<1x8x8xf32>
    %201 = arith.truncf %200 : vector<1x8x8xf32> to vector<1x8x8xbf16>
    %202 = vector.extract_strided_slice %130 {offsets = [0, 0, 56], sizes = [1, 8, 8], strides = [1, 1, 1]} : vector<1x8x96xf32> to vector<1x8x8xf32>
    %203 = arith.truncf %202 : vector<1x8x8xf32> to vector<1x8x8xbf16>
    %204 = vector.extract_strided_slice %130 {offsets = [0, 0, 88], sizes = [1, 8, 8], strides = [1, 1, 1]} : vector<1x8x96xf32> to vector<1x8x8xf32>
    %205 = arith.truncf %204 : vector<1x8x8xf32> to vector<1x8x8xbf16>
    "tpu.trace_start"() <{level = 10 : i32, message = "bqd,bkd->bqk"}> : () -> ()
    %cst_63 = arith.constant dense<0.000000e+00> : vector<1x8x8xf32>
    %206 = tpu.matmul %201, %203, %cst_63 {dimension_numbers = #tpu.dot_dimension_numbers<[2], [2], [1], [1], [0, 0, 0, 1, 1, 1], [0], [0]>} : vector<1x8x8xbf16>, vector<1x8x8xbf16>, vector<1x8x8xf32> -> vector<1x8x8xf32>
    %cst_64 = arith.constant -1.000000e+30 : f32
    "tpu.trace_stop"() : () -> ()
    %207 = vector.broadcast %cst_64 : f32 to vector<1x8x8xf32>
    %208 = arith.select %136, %206, %207 : vector<1x8x8xi1>, vector<1x8x8xf32>
    %cst_65 = arith.constant dense<0xFF800000> : vector<1x8xf32>
    %209 = vector.multi_reduction <maximumf>, %208, %cst_65 [2] : vector<1x8x8xf32> to vector<1x8xf32>
    %210 = vector.shape_cast %209 : vector<1x8xf32> to vector<1x8x1xf32>
    %211 = vector.broadcast %210 : vector<1x8x1xf32> to vector<1x8x8xf32>
    %212 = arith.subf %208, %211 : vector<1x8x8xf32>
    %213 = math.exp %212 : vector<1x8x8xf32>
    %cst_66 = arith.constant dense<0.000000e+00> : vector<1x8xf32>
    %214 = vector.multi_reduction <add>, %213, %cst_66 [2] : vector<1x8x8xf32> to vector<1x8xf32>
    %215 = vector.shape_cast %214 : vector<1x8xf32> to vector<1x8x1xf32>
    %216 = tpu.reciprocal %215 {approx = true} : vector<1x8x1xf32> -> vector<1x8x1xf32>
    %217 = vector.broadcast %216 : vector<1x8x1xf32> to vector<1x8x8xf32>
    %218 = arith.mulf %213, %217 : vector<1x8x8xf32>
    %219 = arith.truncf %218 : vector<1x8x8xf32> to vector<1x8x8xbf16>
    "tpu.trace_start"() <{level = 10 : i32, message = "bqk,bkd->bqd"}> : () -> ()
    %cst_67 = arith.constant dense<0.000000e+00> : vector<1x8x8xf32>
    %220 = tpu.matmul %219, %205, %cst_67 {dimension_numbers = #tpu.dot_dimension_numbers<[2], [1], [1], [2], [0, 0, 0, 1, 1, 2], [0], [0]>} : vector<1x8x8xbf16>, vector<1x8x8xbf16>, vector<1x8x8xf32> -> vector<1x8x8xf32>
    "tpu.trace_stop"() : () -> ()
    %221 = tpu.concatenate %157, %178, %199, %220 in 2 : vector<1x8x8xf32>, vector<1x8x8xf32>, vector<1x8x8xf32>, vector<1x8x8xf32> -> vector<1x8x32xf32>
    %222 = vector.shape_cast %221 : vector<1x8x32xf32> to vector<8x32xf32>
    %223 = arith.truncf %222 : vector<8x32xf32> to vector<8x32xbf16>
    %c1_68 = arith.constant 1 : index
    %c0_69 = arith.constant 0 : index
    %c0_70 = arith.constant 0 : index
    %224 = vector.load %arg4[%c1_68, %c0_69, %c0_70] : memref<2x32x32xbf16, #tpu.memory_space<vmem>>, vector<1x32x32xbf16>
    %225 = vector.shape_cast %224 : vector<1x32x32xbf16> to vector<32x32xbf16>
    %cst_71 = arith.constant dense<0.000000e+00> : vector<8x32xf32>
    %226 = tpu.matmul %223, %225, %cst_71 {dimension_numbers = #tpu.dot_dimension_numbers<[1], [0], [0], [1], [0, 0, 1, 1], [], []>} : vector<8x32xbf16>, vector<32x32xbf16>, vector<8x32xf32> -> vector<8x32xf32>
    %c1_72 = arith.constant 1 : index
    %c0_73 = arith.constant 0 : index
    %c0_74 = arith.constant 0 : index
    %227 = vector.load %arg5[%c1_72, %c0_73, %c0_74] : memref<2x1x32xf32, #tpu.memory_space<vmem>>, vector<1x1x32xf32>
    %228 = vector.shape_cast %227 : vector<1x1x32xf32> to vector<1x32xf32>
    %229 = vector.broadcast %228 : vector<1x32xf32> to vector<8x32xf32>
    %230 = arith.addf %226, %229 : vector<8x32xf32>
    %231 = arith.addf %121, %230 : vector<8x32xf32>
    %cst_75 = arith.constant dense<0.000000e+00> : vector<8xf32>
    %232 = vector.multi_reduction <add>, %231, %cst_75 [1] : vector<8x32xf32> to vector<8xf32>
    %233 = vector.shape_cast %232 : vector<8xf32> to vector<8x1xf32>
    %cst_76 = arith.constant 3.200000e+01 : f32
    %234 = vector.broadcast %cst_76 : f32 to vector<8x1xf32>
    %235 = arith.divf %233, %234 : vector<8x1xf32>
    %236 = vector.broadcast %235 : vector<8x1xf32> to vector<8x32xf32>
    %237 = arith.subf %231, %236 : vector<8x32xf32>
    %238 = arith.mulf %237, %237 : vector<8x32xf32>
    %cst_77 = arith.constant dense<0.000000e+00> : vector<8xf32>
    %239 = vector.multi_reduction <add>, %238, %cst_77 [1] : vector<8x32xf32> to vector<8xf32>
    %240 = vector.shape_cast %239 : vector<8xf32> to vector<8x1xf32>
    %cst_78 = arith.constant 3.200000e+01 : f32
    %241 = vector.broadcast %cst_78 : f32 to vector<8x1xf32>
    %242 = arith.divf %240, %241 : vector<8x1xf32>
    %cst_79 = arith.constant 9.99999974E-6 : f32
    %243 = vector.broadcast %cst_79 : f32 to vector<8x1xf32>
    %244 = arith.addf %242, %243 : vector<8x1xf32>
    %245 = math.rsqrt %244 : vector<8x1xf32>
    %246 = vector.broadcast %245 : vector<8x1xf32> to vector<8x32xf32>
    %247 = arith.mulf %237, %246 : vector<8x32xf32>
    %c1_80 = arith.constant 1 : index
    %c0_81 = arith.constant 0 : index
    %c0_82 = arith.constant 0 : index
    %248 = vector.load %arg6[%c1_80, %c0_81, %c0_82] : memref<2x1x32xf32, #tpu.memory_space<vmem>>, vector<1x1x32xf32>
    %249 = vector.shape_cast %248 : vector<1x1x32xf32> to vector<1x32xf32>
    %250 = vector.broadcast %249 : vector<1x32xf32> to vector<8x32xf32>
    %251 = arith.mulf %247, %250 : vector<8x32xf32>
    %c1_83 = arith.constant 1 : index
    %c0_84 = arith.constant 0 : index
    %c0_85 = arith.constant 0 : index
    %252 = vector.load %arg7[%c1_83, %c0_84, %c0_85] : memref<2x1x32xf32, #tpu.memory_space<vmem>>, vector<1x1x32xf32>
    %253 = vector.shape_cast %252 : vector<1x1x32xf32> to vector<1x32xf32>
    %254 = vector.broadcast %253 : vector<1x32xf32> to vector<8x32xf32>
    %255 = arith.addf %251, %254 : vector<8x32xf32>
    %256 = vector.shape_cast %255 : vector<8x32xf32> to vector<1x8x32xf32>
    %c0_86 = arith.constant 0 : index
    %c0_87 = arith.constant 0 : index
    %c0_88 = arith.constant 0 : index
    %257 = vector.load %arg8[%c0_86, %c0_87, %c0_88] : memref<1x8x32xf32, #tpu.memory_space<vmem>>, vector<1x8x32xf32>
    tpu.vector_store %arg8[%c0_86, %c0_87, %c0_88], %256 {strides = array<i32>} : memref<1x8x32xf32, #tpu.memory_space<vmem>>, vector<1x8x32xf32>,
    return
  }
  func.func @transform_0(%arg0: i32) -> (i32, i32, i32) {
    %c0_i32 = arith.constant 0 : i32
    %c0_i32_0 = arith.constant 0 : i32
    %c0_i32_1 = arith.constant 0 : i32
    return %arg0, %c0_i32, %c0_i32_0 : i32, i32, i32
  }
  func.func @transform_1(%arg0: i32) -> (i32, i32, i32) {
    %c0_i32 = arith.constant 0 : i32
    %c0_i32_0 = arith.constant 0 : i32
    %c0_i32_1 = arith.constant 0 : i32
    %c0_i32_2 = arith.constant 0 : i32
    return %c0_i32, %c0_i32_0, %c0_i32_1 : i32, i32, i32
  }
  func.func @transform_2(%arg0: i32) -> (i32, i32, i32) {
    %c0_i32 = arith.constant 0 : i32
    %c0_i32_0 = arith.constant 0 : i32
    %c0_i32_1 = arith.constant 0 : i32
    %c0_i32_2 = arith.constant 0 : i32
    return %c0_i32, %c0_i32_0, %c0_i32_1 : i32, i32, i32
  }
  func.func @transform_3(%arg0: i32) -> (i32, i32, i32) {
    %c0_i32 = arith.constant 0 : i32
    %c0_i32_0 = arith.constant 0 : i32
    %c0_i32_1 = arith.constant 0 : i32
    %c0_i32_2 = arith.constant 0 : i32
    return %c0_i32, %c0_i32_0, %c0_i32_1 : i32, i32, i32
  }
  func.func @transform_4(%arg0: i32) -> (i32, i32, i32) {
    %c0_i32 = arith.constant 0 : i32
    %c0_i32_0 = arith.constant 0 : i32
    %c0_i32_1 = arith.constant 0 : i32
    %c0_i32_2 = arith.constant 0 : i32
    return %c0_i32, %c0_i32_0, %c0_i32_1 : i32, i32, i32
  }
  func.func @transform_5(%arg0: i32) -> (i32, i32, i32) {
    %c0_i32 = arith.constant 0 : i32
    %c0_i32_0 = arith.constant 0 : i32
    %c0_i32_1 = arith.constant 0 : i32
    %c0_i32_2 = arith.constant 0 : i32
    return %c0_i32, %c0_i32_0, %c0_i32_1 : i32, i32, i32
  }
  func.func @transform_6(%arg0: i32) -> (i32, i32, i32) {
    %c0_i32 = arith.constant 0 : i32
    %c0_i32_0 = arith.constant 0 : i32
    %c0_i32_1 = arith.constant 0 : i32
    %c0_i32_2 = arith.constant 0 : i32
    return %c0_i32, %c0_i32_0, %c0_i32_1 : i32, i32, i32
  }
  func.func @transform_7(%arg0: i32) -> (i32, i32, i32) {
    %c0_i32 = arith.constant 0 : i32
    %c0_i32_0 = arith.constant 0 : i32
    %c0_i32_1 = arith.constant 0 : i32
    return %arg0, %c0_i32, %c0_i32_0 : i32, i32, i32
  }
}

</mosaic_0001>

<bundles_post_ra>
// kernel: tpu_custom_call.1
= control target key start
LH: loop header
LB: loop body
LE: loop exit
PB: predicated region body
PF: predicated region fallthrough
CT: control target
= control target key end

     0   :  { %12 = vsyncpa [#allocation3], 0  ;;  %s2724_s0 = inlined_call_operand.hbm [shape: f32[2,8,32], index: 0, kind: input, shape index: {}]   ;;  %s2725_s1 = inlined_call_operand.hbm [shape: bf16[2,32,96], index: 1, kind: input, shape index: {}]   ;;  %s2726_s2 = inlined_call_operand.vmem [shape: f32[2,1,96], index: 2, kind: input, shape index: {}]   ;;  %s2727_s3 = inlined_call_operand.hbm [shape: bf16[2,32,32], index: 3, kind: input, shape index: {}]   ;;  %s2728_s4 = inlined_call_operand.vmem [shape: f32[2,1,32], index: 4, kind: input, shape index: {}]   ;;  %s2729_s5 = inlined_call_operand.vmem [shape: f32[2,1,32], index: 5, kind: input, shape index: {}]   ;;  %s2730_s6 = inlined_call_operand.vmem [shape: f32[2,1,32], index: 6, kind: input, shape index: {}]   ;;  %s2731_s7 = inlined_call_operand.hbm [shape: f32[2,8,32], index: 7, kind: output, shape index: {}]  }
   0x1   :  { %14 = vsyncpa [#allocation3 + $0x1], 0 }
   0x2   :  { %15 = vsyncpa [#allocation6], 0 }
   0x3   :  { %16 = vsyncpa [#allocation4], 0 }
   0x4   :  { %18 = vsyncpa [#allocation4 + $0x1], 0  ;;  %s2270_s24 = smov 0   ;;  %s2272_s25 = smov 0  }
   0x5   :  { %s2274_s26 = smov 0   ;;  %s2276_s27 = smov 0  }
   0x6 LB: > { %s2291_s28 = sadd.s32 4294967295, %s2206_s27   ;;  %s1692_s29 = sadd.s32 4294967294, %s2206_s27   ;;  %s2206_s27 = sphi %s2276_s27, %s2767_s27   ;;  %s2202_s26 = sphi %s2274_s26, %s2766_s26   ;;  %s2198_s25 = sphi %s2272_s25, %s2765_s25   ;;  %s2194_s24 = sphi %s2270_s24, %s2764_s24  }
   0x7   : > { %p44_p0 = scmp.ne.s32.totalorder %s2198_s25, %s2194_s24  ;;  %p2732_p1 = scmp.eq.s32.totalorder %s2291_s28, 0 }
   0x8   : > { %p200_p3 = scmp.eq.s32.totalorder %s1692_s29, 1  ;;  %p1693_p5 = scmp.ge.s32.totalorder %s2206_s27, 1 }
   0x9   : > { %p2300_p4 = por %p2732_p1, %p44_p0  ;;  %p207_p7 = scmp.lt.s32.totalorder %s2206_s27, 3 }
   0xa   : > { %p2305_p6 = por %p200_p3, %p44_p0  ;;  %s2208_s10 = smov [#allocation5]  }
   0xb   : > { %s2743_s30 = scalar_select %p2300_p4, 1, 0 }
   0xc   : > { %s2744_s8 = scalar_select %p2305_p6, 1, 0 }
   0xd   : > { %p2310_p8 = pnand %p1693_p5, %p207_p7  ;;  %s219_s11 = sshll.u32 %s2208_s10, 4  ;;  %s2314_s11 = int_to_ptr.vmem [resolvable:$true] %s219_s11 }
   0xe   : > { %s2209_s13 = smov [#allocation7]   ;;  %s2050_s17 = scalar_lea.hbm %s2725_s1, 512 }
   0xf   : > { %p1933_p9 = pneg %p2310_p8  ;;  %s235_s14 = sshll.u32 %s2209_s13, 4  ;;  %s2325_s14 = int_to_ptr.vmem [resolvable:$true] %s235_s14 }
  0x10   : > { %p2051_p12 = scmp.ne.s32.totalorder %s2725_s1, %s2050_s17  ;;  %p2057_p5 = scmp.lt.u32.totalorder %s2050_s17, %s2725_s1 }
  0x11   : > { %p2321_p11 = pnand %p1933_p9, %p2732_p1 }
  0x13   : > { %p2052_p13 = pneg %p2321_p11 }
  0x15   : > { %p2053_p0 = pnand %p2052_p13, %p2051_p12 }
  0x17   : > { %p2054_p3 = pneg %p2053_p0 }
  0x19   : > { %p2059_p7 = pnand %p2057_p5, %p2054_p3 }
  0x1b   : > { %2062 = shalt.err (!%p2059_p7)
}
  0x1c   : > { %s2063_s22 = scalar_lea.vmem %s2314_s11, 512  ;;  %p2071_p2 = scmp.lt.s32.totalorder %s2314_s11, %s2314_s11 }
  0x1d   : > { %p2064_p9 = scmp.ne.s32.totalorder %s2314_s11, %s2063_s22  ;;  %p2072_p12 = scmp.lt.s32.totalorder %s2063_s22, %s2063_s22 }
  0x1f   : > { %p2066_p10 = pnand %p2064_p9, %p2052_p13  ;;  %p2073_p0 = por %p2072_p12, %p2071_p2 }
  0x21   : > { %p2067_p1 = pneg %p2066_p10 }
  0x23   : > { %p2074_p6 = pnand %p2073_p0, %p2067_p1 }
  0x25   : > { %2077 = shalt.err (!%p2074_p6)
}
  0x26   : > { %s2210_s23 = smov 64   ;;  %s2211_s29 = smov 4  }
  0x27   : > { %1936 = dma.hbm_to_vmem [thread:$0]  (!%p2321_p11), %s2725_s1, 512, %s2314_s11, [#allocation6], %s2210_s23, %s2210_s23, %s2211_s29  }
  0x28   : > { %s2078_s17 = scalar_lea.hbm %s2727_s3, 512 }
  0x29   : > { %p2079_p2 = scmp.ne.s32.totalorder %s2727_s3, %s2078_s17  ;;  %p2085_p10 = scmp.lt.u32.totalorder %s2078_s17, %s2727_s3 }
  0x2b   : > { %p2081_p1 = pnand %p2079_p2, %p2052_p13 }
  0x2d   : > { %p2082_p6 = pneg %p2081_p1 }
  0x2f   : > { %p2087_p3 = pnand %p2085_p10, %p2082_p6 }
  0x31   : > { %2090 = shalt.err (!%p2087_p3)
}
  0x32   : > { %s2091_s11 = scalar_lea.vmem %s2325_s14, 512  ;;  %p2099_p12 = scmp.lt.s32.totalorder %s2325_s14, %s2325_s14 }
  0x33   : > { %p2092_p5 = scmp.ne.s32.totalorder %s2325_s14, %s2091_s11  ;;  %p2100_p0 = scmp.lt.s32.totalorder %s2091_s11, %s2091_s11 }
  0x35   : > { %p2094_p7 = pnand %p2092_p5, %p2052_p13  ;;  %p2101_p2 = por %p2100_p0, %p2099_p12 }
  0x37   : > { %p2095_p9 = pneg %p2094_p7 }
  0x39   : > { %p2102_p1 = pnand %p2101_p2, %p2095_p9 }
  0x3b   : > { %2105 = shalt.err (!%p2102_p1)
}
  0x3c   : > { %1939 = dma.hbm_to_vmem [thread:$0]  (!%p2321_p11), %s2727_s3, 512, %s2325_s14, [#allocation6], %s2210_s23, %s2210_s23, %s2211_s29  }
  0x3d   : > { %s2380_s13 = sadd.s32 1, %s2206_s27   ;;  %s31_s12 = sadd.s32 1, %s2202_s26 }
  0x3e   : > { %s28_s15 = ssub.s32 %s2206_s27, %s2380_s13  ;;  %p38_p13 = scmp.ne.s32.totalorder %s2202_s26, %s2198_s25 }
  0x3f   : > { %p29_p6 = scmp.eq.s32.totalorder %s28_s15, 0  ;;  %p39_p10 = scmp.eq.s32.totalorder %s2206_s27, 0 }
  0x40   : > { %p2747_p3 = scmp.eq.s32.totalorder %s2291_s28, 1  ;;  %p1950_p7 = scmp.lt.s32.totalorder %s2206_s27, 2 }
  0x41   : > { %s2396_s17 = scalar_select %p29_p6, %s2202_s26, %s31_s12  }
  0x42   : > { %p2390_p5 = por %p2747_p3, %p38_p13  ;;  %p40_p9 = por %p39_p10, %p38_p13 }
  0x43   : > { %s258_s18 = sand.u32 1, %s2202_s26   ;;  %s1698_s14 = sshll.u32 %s2206_s27, 7 }
  0x44   : > { %s2748_s16 = scalar_select %p2390_p5, 1, 0 }
  0x45   : > { %s1697_s19 = sshll.u32 %s258_s18, 3  ;;  %s2403_s20 = scalar_lea.hbm %s2724_s0, %s1698_s14 }
  0x46   : > { %s262_s21 = scalar_lea.vmem [#allocation2], %s1697_s19  ;;  %p2407_p11 = pnand %p1950_p7, %p40_p9 }
  0x47   : > { %s269_s11 = sshll.u32 %s262_s21, 4  ;;  %s259_s10 = scalar_lea.sflag [#allocation3], %s258_s18  ;;  %s2405_s11 = int_to_ptr.vmem [resolvable:$true] %s269_s11 }
  0x48   : > { %s2106_s12 = scalar_lea.hbm %s2403_s20, 128  ;;  %p2108_p0 = pneg %p2407_p11 }
  0x49   : > { %p2107_p12 = scmp.ne.s32.totalorder %s2403_s20, %s2106_s12  ;;  %s2111_s14 = scalar_lea.hbm %s2724_s0, 256 }
  0x4a   : > { %p2112_p13 = scmp.lt.u32.totalorder %s2403_s20, %s2724_s0  ;;  %p2113_p6 = scmp.lt.u32.totalorder %s2111_s14, %s2106_s12 }
  0x4b   : > { %p2109_p2 = pnand %p2108_p0, %p2107_p12  ;;  %p2115_p3 = scmp.lt.u32.totalorder %s2106_s12, %s2403_s20 }
  0x4c   : > { %p2114_p10 = por %p2113_p6, %p2112_p13 }
  0x4d   : > { %p2110_p1 = pneg %p2109_p2 }
  0x4e   : > { %p2116_p7 = por %p2115_p3, %p2114_p10 }
  0x50   : > { %p2117_p9 = pnand %p2116_p7, %p2110_p1 }
  0x52   : > { %2120 = shalt.err (!%p2117_p9)
}
  0x53   : > { %s2121_s18 = scalar_lea.vmem %s2405_s11, 128  ;;  %s2212_s21 = smov [#allocation2]  }
  0x54   : > { %p2122_p12 = scmp.ne.s32.totalorder %s2405_s11, %s2121_s18  ;;  %s2126_s15 = sshll.u32 %s2212_s21, 4  ;;  %s2127_s15 = int_to_ptr.vmem [resolvable:$false] %s2126_s15 }
  0x55   : > { %s2128_s19 = scalar_lea.vmem %s2127_s15, 256  ;;  %p2129_p4 = scmp.lt.s32.totalorder %s2405_s11, %s2127_s15 }
  0x56   : > { %p2124_p2 = pnand %p2122_p12, %p2108_p0  ;;  %p2130_p13 = scmp.lt.s32.totalorder %s2128_s19, %s2121_s18 }
  0x58   : > { %p2125_p5 = pneg %p2124_p2  ;;  %p2131_p6 = por %p2130_p13, %p2129_p4 }
  0x5a   : > { %p2132_p10 = pnand %p2131_p6, %p2125_p5 }
  0x5c   : > { %2135 = shalt.err (!%p2132_p10)
}
  0x5d   : > { %1943 = dma.hbm_to_vmem [thread:$0]  (!%p2407_p11), %s2403_s20, 128, %s2405_s11, %s259_s10  }
  0x5e   : > { %278 = sbr.rel (%p2310_p8) target bundleno = 3708 (0xe7c), region = 48  ;;  %s2439_s12 = sand.u32 (!%p2310_p8), 1, %s2198_s25  }
  0x5f   : > { %s2735_s14 = sshll.u32 (!%p2310_p8), %s2439_s12, 3  ;;  %s281_s23 = scalar_lea.sflag (!%p2310_p8), [#allocation3], %s2439_s12 }
  0x60   : > { %s284_s29 = scalar_lea.vmem (!%p2310_p8), [#allocation2], %s2735_s14  ;;  %p2750_p4 = scmp.ne.s32.totalorder (!%p2310_p8), %s2743_s30, 0 }
  0x65   : > { %2181 = dma.done.wait (%p2750_p4), %s281_s23, 128  }
  0x66   : > { %2183 = vsyncadd (%p2750_p4), %s281_s23, 4294967168  ;;  %p2751_p5 = scmp.eq.s32.totalorder %s2291_s28, 0 }
  0x68   : > { %2185 = dma.done.wait (%p2751_p5), [#allocation6], 1024   ;;  %p2752_p8 = pmov %p2751_p5 }
  0x69   : > { %v2213_v0 = vmov 0.0   ;;  %vm2214_vm0 = vmmov 0   ;;  %v2006_v1 = vld [vmem:[#allocation5] sm:$0xff]   ;;  %v2007_v2 = vld [vmem:[#allocation5 + $0x8] sm:$0xff]   ;;  %v2459_v3 = vld [vmem:[%s284_s29] sm:$0xff]  ;;  %vm349_vm1 = vcmask 261120  }
  0x6a   : > { %2187 = vsyncadd (%p2752_p8), [#allocation6], 4294966272  ;;  %1793 = vmatprep.subr.bf16.mxu0 %v2213_v0  ;;  %1797 = vmatprep.mubr.msk.bf16.mxu0 %vm2214_vm0, %v2213_v0  ;;  %v325_v4 = vpack.c.bf16 %v2459_v3, %v2459_v3  ;;  %v1704_v5 = vld [vmem:[%s2726_s2] ss:$0 sm:$0xff]  ;;  %s2215_s20 = smov 120   ;;  %s2216_s11 = smov 96  }
  0x6b   : > { %1801 = vmatprep.subr.bf16.mxu1 %v2213_v0  ;;  %1803 = vmatprep.mubr.msk.bf16.mxu1 %vm2214_vm0, %v2213_v0  ;;  %s2217_s22 = smov 80   ;;  %s2218_s10 = smov 88   ;;  %vm397_vm2 = vcmask 64512   ;;  %vm461_vm3 = vcmask 1043456   ;;  %vm848_vm4 = vcmask 130048   ;;  %vm850_vm5 = vcmask 195584  }
  0x6c   : > { %1794 = vmatpush3.bf16.msra.mxu0 %v2006_v1  ;;  %s2219_s18 = smov 72   ;;  %s2220_s21 = smov 112  }
  0x6d   : > { %1795 = vmatprep.subr.bf16.mxu0 %v2213_v0  ;;  %s2221_s15 = smov 104   ;;  %s2742_s19 = smov 56  }
  0x6e   : > { %s2741_s23 = smov 64   ;;  %s2740_s29 = smov 40  }
  0x6f   : > { %s2739_s30 = smov 48   ;;  %s2736_s9 = smov 8  }
  0x70   : > { %1796 = vmatpush3.bf16.msra.mxu0 %v2007_v2  ;;  %s2738_s14 = smov 16   ;;  %p2761_p0 = scmp.ne.s32.totalorder %s2748_s16, 0 }
  0x71   : > { %1807 = vmatprep.subr.bf16.mxu0 %v2213_v0 }
  0x73   : > { %1798 = vmatmul.mubr.msk.bf16.vlgmr.msra.gmra.mrb[0].mxu0 %vm349_vm1, %v325_v4 }
  0x74   : > { %1809 = vmatprep.mubr.msk.bf16.mxu0 %vm2214_vm0, %v2213_v0 }
 0x146   : > { %v387_v6 = vpop.f32.mrb[0].mxu0 }
 0x147   : > { %v388_v7 = vadd.f32 %v1704_v5, %v387_v6  ;;  %v1799_v8 = vpop.f32.mrb[1].mxu0 }
 0x148   : > { %v390_v9 = vpop.f32.mrb[2].mxu0 }
 0x149   : > { %v2471_v10 = vpack.c.bf16 %v388_v7, %v388_v7  ;;  %v1800_v11 = vpop.f32.mrb[3].mxu0 }
 0x14b   : > { %505 = vrot.lane.b32.xlu1 %v2471_v10, %s2215_s20  ;;  %395 = vrot.lane.b32.xlu0 %v2471_v10, %s2216_s11 }
 0x14f   : > { %617 = vrot.lane.b32.xlu1 %v2471_v10, %s2217_s22  ;;  %507 = vrot.lane.b32.xlu0 %v2471_v10, %s2218_s10 }
 0x153   : > { %727 = vrot.lane.b32.xlu1 %v2471_v10, %s2219_s18  ;;  %615 = vrot.lane.b32.xlu0 %v2471_v10, %s2220_s21 }
 0x157   : > { %725 = vrot.lane.b32.xlu0 %v2471_v10, %s2221_s15 }
 0x1bd   : > { %v396_v12 = vpop.permute.xlu0 %395  ;;  %v506_v15 = vpop.permute.xlu1 %505 }
 0x1be   : > { %v402_v13 = vsel %vm397_vm2, %v396_v12, 0 }
 0x1bf   : > { %1802 = vmatpush3.bf16.xpose.msra.mxu1 %v402_v13 }
 0x1c0   : > { %1813 = vmatprep.subr.bf16.mxu1 %v2213_v0 }
 0x1c1   : > { %v508_v14 = vpop.permute.xlu0 %507  ;;  %v618_v17 = vpop.permute.xlu1 %617 }
 0x1c2   : > { %v513_v16 = vsel %vm397_vm2, %v508_v14, 0  ;;  %v623_v18 = vsel %vm397_vm2, %v618_v17, 0 }
 0x1c5   : > { %v728_v19 = vpop.permute.xlu1 %727  ;;  %v616_v20 = vpop.permute.xlu0 %615 }
 0x1c6   : > { %1804 = vmatmul.mubr.msk.bf16.vlgmr.msra.gmra.mrb[0].mxu1 %vm397_vm2, %v2471_v10  ;;  %v733_v21 = vsel %vm397_vm2, %v728_v19, 0 }
 0x1c7   : > { %1814 = vmatpush3.bf16.xpose.msra.mxu1 %v513_v16  ;;  %1815 = vmatprep.mubr.msk.bf16.mxu1 %vm2214_vm0, %v2213_v0 }
 0x1c8   : > { %1825 = vmatprep.subr.bf16.mxu1 %v2213_v0 }
 0x1c9   : > { %v726_v22 = vpop.permute.xlu0 %725 }
 0x1ce   : > { %1816 = vmatmul.mubr.msk.bf16.vlgmr.msra.gmra.mrb[4].mxu1 %vm397_vm2, %v506_v15 }
 0x1cf   : > { %1826 = vmatpush3.bf16.xpose.msra.mxu1 %v623_v18  ;;  %1827 = vmatprep.mubr.msk.bf16.mxu1 %vm2214_vm0, %v2213_v0 }
 0x1d0   : > { %1837 = vmatprep.subr.bf16.mxu1 %v2213_v0 }
 0x1d6   : > { %1828 = vmatmul.mubr.msk.bf16.vlgmr.msra.gmra.mrb[8].mxu1 %vm397_vm2, %v616_v20 }
 0x1d7   : > { %1838 = vmatpush3.bf16.xpose.msra.mxu1 %v733_v21  ;;  %1839 = vmatprep.mubr.msk.bf16.mxu1 %vm2214_vm0, %v2213_v0 }
 0x1d8   : > { %1849 = vmatprep.subr.bf16.mxu1 %v2213_v0 }
 0x1de   : > { %1840 = vmatmul.mubr.msk.bf16.vlgmr.msra.gmra.mrb[12].mxu1 %vm397_vm2, %v726_v22 }
 0x1df   : > { %1853 = vmatprep.mubr.msk.bf16.mxu1 %vm2214_vm0, %v2213_v0 }
 0x299   : > { %v438_v23 = vpop.f32.mrb[0].mxu1 }
 0x29a   : > { %v1805_v24 = vpop.f32.mrb[1].mxu1  ;;  %v444_v25 = vsel %vm397_vm2, %v438_v23, -inf }
 0x29b   : > { %445 = vmax.xlane.f32.xlu1 %v444_v25  ;;  %v441_v26 = vpop.f32.mrb[2].mxu1 }
 0x29c   : > { %v1806_v27 = vpop.f32.mrb[3].mxu1 }
 0x2a1   : > { %v549_v28 = vpop.f32.mrb[4].mxu1 }
 0x2a2   : > { %v1817_v29 = vpop.f32.mrb[5].mxu1  ;;  %v555_v30 = vsel %vm397_vm2, %v549_v28, -inf }
 0x2a3   : > { %556 = vmax.xlane.f32.xlu0 %v555_v30  ;;  %v552_v31 = vpop.f32.mrb[6].mxu1 }
 0x2a4   : > { %v1818_v32 = vpop.f32.mrb[7].mxu1 }
 0x2a9   : > { %v659_v33 = vpop.f32.mrb[8].mxu1 }
 0x2aa   : > { %v1829_v34 = vpop.f32.mrb[9].mxu1  ;;  %v665_v35 = vsel %vm397_vm2, %v659_v33, -inf }
 0x2ab   : > { %666 = vmax.xlane.f32.xlu0 %v665_v35  ;;  %v662_v36 = vpop.f32.mrb[10].mxu1  ;;  %v2009_v34 = vld [vmem:[#allocation7 + $0x8] sm:$0xff]  }
 0x2ac   : > { %v1830_v37 = vpop.f32.mrb[11].mxu1 }
 0x2b1   : > { %v769_v38 = vpop.f32.mrb[12].mxu1 }
 0x2b2   : > { %v1841_v39 = vpop.f32.mrb[13].mxu1  ;;  %v775_v40 = vsel %vm397_vm2, %v769_v38, -inf }
 0x2b3   : > { %776 = vmax.xlane.f32.xlu1 %v775_v40  ;;  %v772_v41 = vpop.f32.mrb[14].mxu1 }
 0x2b4   : > { %v1842_v42 = vpop.f32.mrb[15].mxu1 }
 0x328   : > { %v446_v43 = vpop.xlane.xlu1 %445 }
 0x329   : > { %v447_v44 = vsub.f32 %v438_v23, %v446_v43 }
 0x32b   : > { %v448_v45 = vmul.f32 1.442695, %v447_v44 }
 0x32d   : > { %2014 = vpow2.f32 %v448_v45 }
 0x330   : > { %v557_v46 = vpop.xlane.xlu0 %556 }
 0x331   : > { %v558_v47 = vsub.f32 %v549_v28, %v557_v46 }
 0x333   : > { %v559_v48 = vmul.f32 1.442695, %v558_v47 }
 0x335   : > { %2016 = vpow2.f32 %v559_v48 }
 0x337   : > { %v2015_v49 = vpop.eup %2014 }
 0x338   : > { %v667_v50 = vpop.xlane.xlu0 %666  ;;  %v450_v51 = vsel %vm397_vm2, %v2015_v49, 0.0 }
 0x339   : > { %v668_v52 = vsub.f32 %v659_v33, %v667_v50  ;;  %451 = vadd.xlane.f32.xlu0 %v450_v51  ;;  %v2008_v33 = vld [vmem:[#allocation7] sm:$0xff]   ;;  %v1716_v50 = vld [vmem:[%s2728_s4] ss:$0 sm:$0xff] }
 0x33a   : > { %1850 = vmatpush3.bf16.msra.mxu1 %v2008_v33 }
 0x33b   : > { %v669_v53 = vmul.f32 1.442695, %v668_v52  ;;  %1851 = vmatprep.subr.bf16.mxu1 %v2213_v0 }
 0x33d   : > { %2018 = vpow2.f32 %v669_v53 }
 0x33e   : > { %1852 = vmatpush3.bf16.msra.mxu1 %v2009_v34 }
 0x33f   : > { %v2017_v54 = vpop.eup %2016  ;;  %1865 = vmatprep.subr.bf16.mxu1 %v2213_v0 }
 0x340   : > { %v561_v55 = vsel %vm397_vm2, %v2017_v54, 0.0  ;;  %v777_v58 = vpop.xlane.xlu1 %776 }
 0x341   : > { %562 = vadd.xlane.f32.xlu1 %v561_v55  ;;  %v778_v59 = vsub.f32 %v769_v38, %v777_v58 }
 0x343   : > { %v779_v60 = vmul.f32 1.442695, %v778_v59 }
 0x345   : > { %2020 = vpow2.f32 %v779_v60 }
 0x347   : > { %v2019_v56 = vpop.eup %2018 }
 0x348   : > { %v671_v57 = vsel %vm397_vm2, %v2019_v56, 0.0 }
 0x349   : > { %672 = vadd.xlane.f32.xlu0 %v671_v57 }
 0x34f   : > { %v2021_v61 = vpop.eup %2020 }
 0x350   : > { %v781_v62 = vsel %vm397_vm2, %v2021_v61, 0.0 }
 0x352   : > { %567 = vrot.lane.b32.xlu1 %v2471_v10, %s2742_s19  ;;  %s1590_s19 = scalar_lea.sflag [#allocation4], %s2439_s12 }
 0x35f   : > { %456 = vrot.lane.b32.xlu0 %v2471_v10, %s2741_s23 }
 0x363   : > { %787 = vrot.lane.b32.xlu0 %v2471_v10, %s2740_s29 }
 0x376   : > { %782 = vadd.xlane.f32.xlu1 %v781_v62 }
 0x387   : > { %677 = vrot.lane.b32.xlu1 %v2471_v10, %s2739_s30 }
 0x3c6   : > { %v452_v63 = vpop.xlane.xlu0 %451 }
 0x3c7   : > { %2022 = vrcp.f32 %v452_v63  ;;  %v2010_v63 = vld [vmem:[#allocation5 + $0x10] sm:$0xff]  }
 0x3ce   : > { %v563_v1 = vpop.xlane.xlu1 %562 }
 0x3cf   : > { %2024 = vrcp.f32 %v563_v1  ;;  %v2011_v1 = vld [vmem:[#allocation5 + $0x18] sm:$0xff]  }
 0x3d1   : > { %v2023_v2 = vpop.eup %2022 }
 0x3d2   : > { %v454_v5 = vmul.f32 %v2023_v2, %v2015_v49  ;;  %v568_v8 = vpop.permute.xlu1 %567 }
 0x3d3   : > { %v573_v12 = vsel %vm461_vm3, %v568_v8, 0  ;;  %v1721_v8 = vld [vmem:[%s2730_s6] ss:$0 sm:$0xff] }
 0x3d4   : > { %v455_v9 = vpack.c.bf16 %v454_v5, %v454_v5 }
 0x3d6   : > { %v673_v4 = vpop.xlane.xlu0 %672 }
 0x3d7   : > { %2026 = vrcp.f32 %v673_v4 }
 0x3d9   : > { %v2025_v11 = vpop.eup %2024 }
 0x3da   : > { %v457_v6 = vpop.permute.xlu0 %456  ;;  %v565_v10 = vmul.f32 %v2025_v11, %v2017_v54 }
 0x3db   : > { %v463_v7 = vsel %vm461_vm3, %v457_v6, 0  ;;  %v1720_v6 = vld [vmem:[%s2729_s5] ss:$0 sm:$0xff] }
 0x3dc   : > { %1808 = vmatpush3.bf16.msra.mxu0 %v463_v7  ;;  %v566_v13 = vpack.c.bf16 %v565_v10, %v565_v10  ;;  %v1723_v10 = vld [vmem:[%s2726_s2 + $0x1] ss:$0 sm:$0xff] }
 0x3dd   : > { %1819 = vmatprep.subr.bf16.mxu0 %v2213_v0 }
 0x3de   : > { %v788_v19 = vpop.permute.xlu0 %787 }
 0x3df   : > { %1810 = vmatmul.mubr.msk.bf16.vlgmr.msra.gmra.mrb[4].mxu0 %vm397_vm2, %v455_v9  ;;  %v793_v21 = vsel %vm461_vm3, %v788_v19, 0 }
 0x3e0   : > { %1820 = vmatpush3.bf16.msra.mxu0 %v573_v12  ;;  %1821 = vmatprep.mubr.msk.bf16.mxu0 %vm2214_vm0, %v2213_v0 }
 0x3e1   : > { %1831 = vmatprep.subr.bf16.mxu0 %v2213_v0  ;;  %v2027_v14 = vpop.eup %2026 }
 0x3e2   : > { %v675_v16 = vmul.f32 %v2027_v14, %v2019_v56 }
 0x3e4   : > { %v676_v20 = vpack.c.bf16 %v675_v16, %v675_v16 }
 0x3e7   : > { %1822 = vmatmul.mubr.msk.bf16.vlgmr.msra.gmra.mrb[8].mxu0 %vm397_vm2, %v566_v13 }
 0x3e8   : > { %1833 = vmatprep.mubr.msk.bf16.mxu0 %vm2214_vm0, %v2213_v0 }
 0x403   : > { %v783_v15 = vpop.xlane.xlu1 %782 }
 0x404   : > { %2028 = vrcp.f32 %v783_v15 }
 0x407   : > { %v678_v17 = vpop.permute.xlu1 %677 }
 0x408   : > { %v683_v18 = vsel %vm461_vm3, %v678_v17, 0 }
 0x409   : > { %1832 = vmatpush3.bf16.msra.mxu0 %v683_v18 }
 0x40a   : > { %1843 = vmatprep.subr.bf16.mxu0 %v2213_v0 }
 0x40c   : > { %1834 = vmatmul.mubr.msk.bf16.vlgmr.msra.gmra.mrb[12].mxu0 %vm397_vm2, %v676_v20 }
 0x40d   : > { %1844 = vmatpush3.bf16.msra.mxu0 %v793_v21  ;;  %1845 = vmatprep.mubr.msk.bf16.mxu0 %vm2214_vm0, %v2213_v0 }
 0x40e   : > { %v2029_v22 = vpop.eup %2028  ;;  %1857 = vmatprep.subr.bf16.mxu0 %v2213_v0 }
 0x40f   : > { %v785_v23 = vmul.f32 %v2029_v22, %v2021_v61 }
 0x411   : > { %v786_v24 = vpack.c.bf16 %v785_v23, %v785_v23 }
 0x414   : > { %1846 = vmatmul.mubr.msk.bf16.vlgmr.msra.gmra.mrb[16].mxu0 %vm397_vm2, %v786_v24 }
 0x415   : > { %1861 = vmatprep.mubr.msk.bf16.mxu0 %vm2214_vm0, %v2213_v0  ;;  %1858 = vmatpush3.bf16.msra.mxu0 %v2010_v63 }
 0x416   : > { %1859 = vmatprep.subr.bf16.mxu0 %v2213_v0 }
 0x419   : > { %1860 = vmatpush3.bf16.msra.mxu0 %v2011_v1 }
 0x41a   : > { %1871 = vmatprep.subr.bf16.mxu0 %v2213_v0 }
 0x4b2   : > { %v499_v25 = vpop.f32.mrb[4].mxu0 }
 0x4b3   : > { %v1811_v26 = vpop.f32.mrb[5].mxu0 }
 0x4b4   : > { %v502_v27 = vpop.f32.mrb[6].mxu0 }
 0x4b5   : > { %v1812_v28 = vpop.f32.mrb[7].mxu0 }
 0x4ba   : > { %v609_v29 = vpop.f32.mrb[8].mxu0 }
 0x4bb   : > { %836 = vrot.lane.b32.xlu1 %v609_v29, %s2736_s9  ;;  %v1823_v30 = vpop.f32.mrb[9].mxu0  ;;  %s2737_s9 = smov 24  }
 0x4bc   : > { %v612_v31 = vpop.f32.mrb[10].mxu0  ;;  %v1019_v30 = vlaneseq }
 0x4bd   : > { %v1824_v32 = vpop.f32.mrb[11].mxu0 }
 0x4be   : > { %v1020_v31 = vshrl.u32 %v1019_v30, 7  ;;  %v1022_v32 = vand.u32 127, %v1019_v30 }
 0x4c0   : > { %v1023_v33 = vsub.s32 %v1020_v31, %v1022_v32 }
 0x4c2   : > { %v1025_v34 = vsub.s32 0, %v1023_v33 }
 0x4df   : > { %v719_v35 = vpop.f32.mrb[12].mxu0 }
 0x4e0   : > { %840 = vrot.lane.b32.xlu0 %v719_v35, %s2738_s14  ;;  %v1835_v36 = vpop.f32.mrb[13].mxu0  ;;  %v1727_v35 = vmin.u32 %v1025_v34, %v1023_v33 }
 0x4e1   : > { %v722_v37 = vpop.f32.mrb[14].mxu0 }
 0x4e2   : > { %v1836_v38 = vpop.f32.mrb[15].mxu0  ;;  %vm1027_vm6 = vcmp.le.s32.totalorder %v1727_v35, 2 }
 0x4e7   : > { %v829_v39 = vpop.f32.mrb[16].mxu0 }
 0x4e8   : > { %844 = vrot.lane.b32.xlu1 %v829_v39, %s2737_s9  ;;  %v1847_v40 = vpop.f32.mrb[17].mxu0 }
 0x4e9   : > { %v832_v41 = vpop.f32.mrb[18].mxu0 }
 0x4ea   : > { %v1848_v42 = vpop.f32.mrb[19].mxu0 }
 0x52d   : > { %v837_v43 = vpop.permute.xlu1 %836 }
 0x52e   : > { %v847_v45 = vsel %vm397_vm2, %v499_v25, %v837_v43 }
 0x552   : > { %v841_v44 = vpop.permute.xlu0 %840 }
 0x553   : > { %v849_v46 = vsel %vm848_vm4, %v847_v45, %v841_v44 }
 0x55a   : > { %v845_v47 = vpop.permute.xlu1 %844 }
 0x55b   : > { %v851_v48 = vsel %vm850_vm5, %v849_v46, %v845_v47 }
 0x55c   : > { %v852_v49 = vpack.c.bf16 %v851_v48, %v851_v48 }
 0x55e   : > { %1854 = vmatmul.mubr.msk.bf16.vlgmr.msra.gmra.mrb[16].mxu1 %vm349_vm1, %v852_v49 }
 0x55f   : > { %1867 = vmatprep.mubr.msk.bf16.mxu1 %vm2214_vm0, %v2213_v0 }
 0x631   : > { %v913_v51 = vpop.f32.mrb[16].mxu1 }
 0x632   : > { %v914_v52 = vadd.f32 %v1716_v50, %v913_v51  ;;  %v1855_v53 = vpop.f32.mrb[17].mxu1 }
 0x633   : > { %v916_v54 = vpop.f32.mrb[18].mxu1 }
 0x634   : > { %v1856_v55 = vpop.f32.mrb[19].mxu1  ;;  %v919_v56 = vadd.f32 %v914_v52, %v2459_v3 }
 0x636   : > { %v920_v57 = vsel %vm349_vm1, %v919_v56, 0.0 }
 0x637   : > { %921 = vadd.xlane.f32.xlu0 %v920_v57 }
 0x6c4   : > { %v922_v58 = vpop.xlane.xlu0 %921 }
 0x6c5   : > { %v924_v59 = vmul.f32 0.03125, %v922_v58 }
 0x6c7   : > { %v925_v60 = vsub.f32 %v919_v56, %v924_v59 }
 0x6c9   : > { %v926_v61 = vmul.f32 %v925_v60, %v925_v60 }
 0x6cb   : > { %v927_v62 = vsel %vm349_vm1, %v926_v61, 0.0 }
 0x6cc   : > { %928 = vadd.xlane.f32.xlu1 %v927_v62 }
 0x759   : > { %v929_v2 = vpop.xlane.xlu1 %928 }
 0x75a   : > { %v930_v3 = vmul.f32 0.03125, %v929_v2 }
 0x75c   : > { %v931_v4 = vadd.f32 1e-05, %v930_v3 }
 0x75e   : > { %2030 = vrsqrt.f32 %v931_v4 }
 0x768   : > { %v2031_v5 = vpop.eup %2030 }
 0x769   : > { %v933_v7 = vmul.f32 %v2031_v5, %v925_v60 }
 0x76b   : > { %v941_v9 = vmul.f32 %v1720_v6, %v933_v7 }
 0x76d   : > { %v2569_v11 = vadd.f32 %v1721_v8, %v941_v9 }
 0x76f   : > { %v950_v12 = vpack.c.bf16 %v2569_v11, %v2569_v11 }
 0x771   : > { %1862 = vmatmul.mubr.msk.bf16.vlgmr.msra.gmra.mrb[20].mxu0 %vm349_vm1, %v950_v12 }
 0x772   : > { %1873 = vmatprep.mubr.msk.bf16.mxu0 %vm2214_vm0, %v2213_v0 }
 0x844   : > { %v1013_v13 = vpop.f32.mrb[20].mxu0 }
 0x845   : > { %v1014_v14 = vadd.f32 %v1723_v10, %v1013_v13  ;;  %v1863_v15 = vpop.f32.mrb[21].mxu0 }
 0x846   : > { %v1016_v16 = vpop.f32.mrb[22].mxu0 }
 0x847   : > { %v2579_v17 = vpack.c.bf16 %v1014_v14, %v1014_v14  ;;  %v1864_v18 = vpop.f32.mrb[23].mxu0 }
 0x849   : > { %1141 = vrot.lane.b32.xlu1 %v2579_v17, %s2218_s10  ;;  %1030 = vrot.lane.b32.xlu0 %v2579_v17, %s2216_s11  ;;  %s2754_s11 = smov 64   ;;  %s2756_s10 = smov 48  }
 0x84d   : > { %1252 = vrot.lane.b32.xlu1 %v2579_v17, %s2217_s22  ;;  %1139 = vrot.lane.b32.xlu0 %v2579_v17, %s2215_s20  ;;  %s2753_s20 = smov 56   ;;  %s2755_s22 = smov 40  }
 0x851   : > { %1363 = vrot.lane.b32.xlu1 %v2579_v17, %s2219_s18  ;;  %1250 = vrot.lane.b32.xlu0 %v2579_v17, %s2220_s21  ;;  %s2757_s18 = smov 8   ;;  %s2758_s21 = smov 16  }
 0x855   : > { %1361 = vrot.lane.b32.xlu0 %v2579_v17, %s2221_s15  ;;  %s2759_s15 = smov 24  }
 0x8bb   : > { %v1031_v19 = vpop.permute.xlu0 %1030  ;;  %v1142_v21 = vpop.permute.xlu1 %1141 }
 0x8bc   : > { %v1036_v20 = vsel %vm397_vm2, %v1031_v19, 0  ;;  %v1147_v22 = vsel %vm397_vm2, %v1142_v21, 0 }
 0x8bd   : > { %1866 = vmatpush3.bf16.xpose.msra.mxu1 %v1036_v20 }
 0x8be   : > { %1877 = vmatprep.subr.bf16.mxu1 %v2213_v0 }
 0x8bf   : > { %v1253_v23 = vpop.permute.xlu1 %1252  ;;  %v1140_v24 = vpop.permute.xlu0 %1139 }
 0x8c0   : > { %v1258_v25 = vsel %vm397_vm2, %v1253_v23, 0 }
 0x8c3   : > { %v1364_v26 = vpop.permute.xlu1 %1363  ;;  %v1251_v27 = vpop.permute.xlu0 %1250 }
 0x8c4   : > { %1868 = vmatmul.mubr.msk.bf16.vlgmr.msra.gmra.mrb[20].mxu1 %vm397_vm2, %v2579_v17  ;;  %v1369_v28 = vsel %vm397_vm2, %v1364_v26, 0 }
 0x8c5   : > { %1878 = vmatpush3.bf16.xpose.msra.mxu1 %v1147_v22  ;;  %1879 = vmatprep.mubr.msk.bf16.mxu1 %vm2214_vm0, %v2213_v0 }
 0x8c6   : > { %1889 = vmatprep.subr.bf16.mxu1 %v2213_v0 }
 0x8c7   : > { %v1362_v29 = vpop.permute.xlu0 %1361 }
 0x8cc   : > { %1880 = vmatmul.mubr.msk.bf16.vlgmr.msra.gmra.mrb[24].mxu1 %vm397_vm2, %v1140_v24 }
 0x8cd   : > { %1890 = vmatpush3.bf16.xpose.msra.mxu1 %v1258_v25  ;;  %1891 = vmatprep.mubr.msk.bf16.mxu1 %vm2214_vm0, %v2213_v0 }
 0x8ce   : > { %1901 = vmatprep.subr.bf16.mxu1 %v2213_v0 }
 0x8d4   : > { %1892 = vmatmul.mubr.msk.bf16.vlgmr.msra.gmra.mrb[28].mxu1 %vm397_vm2, %v1251_v27 }
 0x8d5   : > { %1902 = vmatpush3.bf16.xpose.msra.mxu1 %v1369_v28  ;;  %1903 = vmatprep.mubr.msk.bf16.mxu1 %vm2214_vm0, %v2213_v0 }
 0x8d6   : > { %1913 = vmatprep.subr.bf16.mxu1 %v2213_v0 }
 0x8dc   : > { %1904 = vmatmul.mubr.msk.bf16.vlgmr.msra.gmra.mrb[32].mxu1 %vm397_vm2, %v1362_v29 }
 0x8dd   : > { %1917 = vmatprep.mubr.msk.bf16.mxu1 %vm2214_vm0, %v2213_v0 }
 0x997   : > { %v1072_v36 = vpop.f32.mrb[20].mxu1 }
 0x998   : > { %v1078_v37 = vsel %vm1027_vm6, %v1072_v36, -1e+30  ;;  %v1869_v38 = vpop.f32.mrb[21].mxu1 }
 0x999   : > { %v1075_v39 = vpop.f32.mrb[22].mxu1  ;;  %v1079_v40 = vsel %vm397_vm2, %v1078_v37, -inf }
 0x99a   : > { %1080 = vmax.xlane.f32.xlu1 %v1079_v40  ;;  %v1870_v41 = vpop.f32.mrb[23].mxu1 }
 0x99f   : > { %v1183_v42 = vpop.f32.mrb[24].mxu1 }
 0x9a0   : > { %v1189_v43 = vsel %vm1027_vm6, %v1183_v42, -1e+30  ;;  %v1881_v44 = vpop.f32.mrb[25].mxu1 }
 0x9a1   : > { %v1186_v45 = vpop.f32.mrb[26].mxu1  ;;  %v1190_v46 = vsel %vm397_vm2, %v1189_v43, -inf }
 0x9a2   : > { %1191 = vmax.xlane.f32.xlu0 %v1190_v46  ;;  %v1882_v47 = vpop.f32.mrb[27].mxu1 }
 0x9a7   : > { %v1294_v48 = vpop.f32.mrb[28].mxu1 }
 0x9a8   : > { %v1300_v49 = vsel %vm1027_vm6, %v1294_v48, -1e+30  ;;  %v1893_v50 = vpop.f32.mrb[29].mxu1 }
 0x9a9   : > { %v1297_v51 = vpop.f32.mrb[30].mxu1  ;;  %v1301_v52 = vsel %vm397_vm2, %v1300_v49, -inf  ;;  %v2012_v50 = vld [vmem:[#allocation7 + $0x10] sm:$0xff]  }
 0x9aa   : > { %1302 = vmax.xlane.f32.xlu0 %v1301_v52  ;;  %v1894_v53 = vpop.f32.mrb[31].mxu1  ;;  %1914 = vmatpush3.bf16.msra.mxu1 %v2012_v50  ;;  %v2013_v51 = vld [vmem:[#allocation7 + $0x18] sm:$0xff]  }
 0x9ab   : > { %1915 = vmatprep.subr.bf16.mxu1 %v2213_v0 }
 0x9ae   : > { %1916 = vmatpush3.bf16.msra.mxu1 %v2013_v51 }
 0x9af   : > { %v1405_v54 = vpop.f32.mrb[32].mxu1 }
 0x9b0   : > { %v1411_v55 = vsel %vm1027_vm6, %v1405_v54, -1e+30  ;;  %v1905_v56 = vpop.f32.mrb[33].mxu1 }
 0x9b1   : > { %v1408_v57 = vpop.f32.mrb[34].mxu1  ;;  %v1412_v58 = vsel %vm397_vm2, %v1411_v55, -inf }
 0x9b2   : > { %1413 = vmax.xlane.f32.xlu1 %v1412_v58  ;;  %v1906_v59 = vpop.f32.mrb[35].mxu1 }
 0xa27   : > { %v1081_v60 = vpop.xlane.xlu1 %1080 }
 0xa28   : > { %v1082_v61 = vsub.f32 %v1078_v37, %v1081_v60 }
 0xa2a   : > { %v1083_v62 = vmul.f32 1.442695, %v1082_v61 }
 0xa2c   : > { %2032 = vpow2.f32 %v1083_v62 }
 0xa2f   : > { %v1192_v63 = vpop.xlane.xlu0 %1191 }
 0xa30   : > { %v1193_v1 = vsub.f32 %v1189_v43, %v1192_v63 }
 0xa32   : > { %v1194_v2 = vmul.f32 1.442695, %v1193_v1 }
 0xa34   : > { %2034 = vpow2.f32 %v1194_v2 }
 0xa36   : > { %v2033_v3 = vpop.eup %2032 }
 0xa37   : > { %v1303_v4 = vpop.xlane.xlu0 %1302  ;;  %v1085_v5 = vsel %vm397_vm2, %v2033_v3, 0.0 }
 0xa38   : > { %v1304_v6 = vsub.f32 %v1300_v49, %v1303_v4  ;;  %1086 = vadd.xlane.f32.xlu0 %v1085_v5 }
 0xa3a   : > { %v1305_v7 = vmul.f32 1.442695, %v1304_v6 }
 0xa3c   : > { %2036 = vpow2.f32 %v1305_v7 }
 0xa3e   : > { %v2035_v8 = vpop.eup %2034 }
 0xa3f   : > { %v1196_v9 = vsel %vm397_vm2, %v2035_v8, 0.0  ;;  %v1414_v13 = vpop.xlane.xlu1 %1413 }
 0xa40   : > { %1197 = vadd.xlane.f32.xlu1 %v1196_v9  ;;  %v1415_v14 = vsub.f32 %v1411_v55, %v1414_v13 }
 0xa42   : > { %v1416_v15 = vmul.f32 1.442695, %v1415_v14 }
 0xa44   : > { %2038 = vpow2.f32 %v1416_v15 }
 0xa46   : > { %v2037_v12 = vpop.eup %2036 }
 0xa47   : > { %v1307_v10 = vsel %vm397_vm2, %v2037_v12, 0.0 }
 0xa48   : > { %1308 = vadd.xlane.f32.xlu0 %v1307_v10 }
 0xa4e   : > { %v2039_v16 = vpop.eup %2038 }
 0xa4f   : > { %v1418_v18 = vsel %vm397_vm2, %v2039_v16, 0.0 }
 0xa51   : > { %1202 = vrot.lane.b32.xlu1 %v2579_v17, %s2753_s20  ;;  %s1746_s20 = sshll.u32 %s2291_s28, 7  ;;  %s2229_s28 = smov [#allocation8]  }
 0xa52   : > { %s2140_s29 = sshll.u32 %s2229_s28, 4  ;;  %s2141_s29 = int_to_ptr.vmem [resolvable:$false] %s2140_s29 }
 0xa53   : > { %s2142_s30 = scalar_lea.vmem %s2141_s29, 256 }
 0xa5e   : > { %1091 = vrot.lane.b32.xlu0 %v2579_v17, %s2754_s11  ;;  %s2760_s11 = sshll.u32 %s2439_s12, 3 }
 0xa62   : > { %1424 = vrot.lane.b32.xlu0 %v2579_v17, %s2755_s22  ;;  %s322_s22 = scalar_lea.vmem [#allocation8], %s2760_s11 }
 0xa75   : > { %1419 = vadd.xlane.f32.xlu1 %v1418_v18 }
 0xa86   : > { %1313 = vrot.lane.b32.xlu1 %v2579_v17, %s2756_s10  ;;  %s1603_s10 = sshll.u32 %s322_s22, 4  ;;  %s2681_s10 = int_to_ptr.vmem [resolvable:$true] %s1603_s10 }
 0xa87   : > { %s2136_s23 = scalar_lea.vmem %s2681_s10, 128  ;;  %p2143_p7 = scmp.lt.s32.totalorder %s2681_s10, %s2141_s29 }
 0xa88   : > { %p2137_p11 = scmp.ne.s32.totalorder %s2681_s10, %s2136_s23  ;;  %p2144_p9 = scmp.lt.s32.totalorder %s2142_s30, %s2136_s23 }
 0xa8a   : > { %p2138_p1 = pnand %p2137_p11, %p2761_p0  ;;  %p2145_p12 = por %p2144_p9, %p2143_p7 }
 0xa8c   : > { %p2139_p3 = pneg %p2138_p1 }
 0xa8e   : > { %p2146_p2 = pnand %p2145_p12, %p2139_p3 }
 0xac5   : > { %v1087_v19 = vpop.xlane.xlu0 %1086 }
 0xac6   : > { %2040 = vrcp.f32 %v1087_v19 }
 0xacd   : > { %v1198_v20 = vpop.xlane.xlu1 %1197 }
 0xace   : > { %2042 = vrcp.f32 %v1198_v20 }
 0xad0   : > { %v2041_v21 = vpop.eup %2040 }
 0xad1   : > { %v1089_v23 = vmul.f32 %v2041_v21, %v2033_v3  ;;  %v1203_v26 = vpop.permute.xlu1 %1202  ;;  %v1737_v3 = vld [vmem:[%s2728_s4 + $0x1] ss:$0 sm:$0xff] }
 0xad2   : > { %v1208_v29 = vsel %vm461_vm3, %v1203_v26, 0 }
 0xad3   : > { %v1090_v27 = vpack.c.bf16 %v1089_v23, %v1089_v23  ;;  %v1744_v23 = vld [vmem:[%s2730_s6 + $0x1] ss:$0 sm:$0xff] }
 0xad5   : > { %v1309_v22 = vpop.xlane.xlu0 %1308 }
 0xad6   : > { %2044 = vrcp.f32 %v1309_v22 }
 0xad8   : > { %v2043_v28 = vpop.eup %2042 }
 0xad9   : > { %v1092_v24 = vpop.permute.xlu0 %1091  ;;  %v1200_v17 = vmul.f32 %v2043_v28, %v2035_v8 }
 0xada   : > { %v1097_v25 = vsel %vm461_vm3, %v1092_v24, 0 }
 0xadb   : > { %1872 = vmatpush3.bf16.msra.mxu0 %v1097_v25  ;;  %v1201_v30 = vpack.c.bf16 %v1200_v17, %v1200_v17 }
 0xadc   : > { %1883 = vmatprep.subr.bf16.mxu0 %v2213_v0 }
 0xadd   : > { %v1425_v36 = vpop.permute.xlu0 %1424 }
 0xade   : > { %1874 = vmatmul.mubr.msk.bf16.vlgmr.msra.gmra.mrb[24].mxu0 %vm397_vm2, %v1090_v27  ;;  %v1430_v38 = vsel %vm461_vm3, %v1425_v36, 0 }
 0xadf   : > { %1884 = vmatpush3.bf16.msra.mxu0 %v1208_v29  ;;  %1885 = vmatprep.mubr.msk.bf16.mxu0 %vm2214_vm0, %v2213_v0 }
 0xae0   : > { %1895 = vmatprep.subr.bf16.mxu0 %v2213_v0  ;;  %v2045_v31 = vpop.eup %2044 }
 0xae1   : > { %v1311_v33 = vmul.f32 %v2045_v31, %v2037_v12 }
 0xae3   : > { %v1312_v37 = vpack.c.bf16 %v1311_v33, %v1311_v33 }
 0xae6   : > { %1886 = vmatmul.mubr.msk.bf16.vlgmr.msra.gmra.mrb[28].mxu0 %vm397_vm2, %v1201_v30 }
 0xae7   : > { %1897 = vmatprep.mubr.msk.bf16.mxu0 %vm2214_vm0, %v2213_v0 }
 0xb02   : > { %v1420_v32 = vpop.xlane.xlu1 %1419 }
 0xb03   : > { %2046 = vrcp.f32 %v1420_v32 }
 0xb06   : > { %v1314_v34 = vpop.permute.xlu1 %1313 }
 0xb07   : > { %v1319_v35 = vsel %vm461_vm3, %v1314_v34, 0 }
 0xb08   : > { %1896 = vmatpush3.bf16.msra.mxu0 %v1319_v35 }
 0xb09   : > { %1907 = vmatprep.subr.bf16.mxu0 %v2213_v0 }
 0xb0b   : > { %1898 = vmatmul.mubr.msk.bf16.vlgmr.msra.gmra.mrb[32].mxu0 %vm397_vm2, %v1312_v37 }
 0xb0c   : > { %1908 = vmatpush3.bf16.msra.mxu0 %v1430_v38  ;;  %1909 = vmatprep.mubr.msk.bf16.mxu0 %vm2214_vm0, %v2213_v0 }
 0xb0d   : > { %v2047_v39 = vpop.eup %2046 }
 0xb0e   : > { %v1422_v40 = vmul.f32 %v2047_v39, %v2039_v16 }
 0xb10   : > { %v1423_v41 = vpack.c.bf16 %v1422_v40, %v1422_v40 }
 0xb13   : > { %1910 = vmatmul.mubr.msk.bf16.vlgmr.msra.gmra.mrb[36].mxu0 %vm397_vm2, %v1423_v41 }
 0xbb1   : > { %v1133_v42 = vpop.f32.mrb[24].mxu0 }
 0xbb2   : > { %v1875_v43 = vpop.f32.mrb[25].mxu0 }
 0xbb3   : > { %v1136_v44 = vpop.f32.mrb[26].mxu0 }
 0xbb4   : > { %v1876_v45 = vpop.f32.mrb[27].mxu0 }
 0xbb9   : > { %v1244_v46 = vpop.f32.mrb[28].mxu0 }
 0xbba   : > { %1473 = vrot.lane.b32.xlu1 %v1244_v46, %s2757_s18  ;;  %v1887_v47 = vpop.f32.mrb[29].mxu0 }
 0xbbb   : > { %v1247_v48 = vpop.f32.mrb[30].mxu0 }
 0xbbc   : > { %v1888_v49 = vpop.f32.mrb[31].mxu0 }
 0xbde   : > { %v1355_v52 = vpop.f32.mrb[32].mxu0 }
 0xbdf   : > { %1477 = vrot.lane.b32.xlu0 %v1355_v52, %s2758_s21  ;;  %v1899_v53 = vpop.f32.mrb[33].mxu0 }
 0xbe0   : > { %v1358_v54 = vpop.f32.mrb[34].mxu0 }
 0xbe1   : > { %v1900_v55 = vpop.f32.mrb[35].mxu0 }
 0xbe6   : > { %v1466_v56 = vpop.f32.mrb[36].mxu0 }
 0xbe7   : > { %1481 = vrot.lane.b32.xlu1 %v1466_v56, %s2759_s15  ;;  %v1911_v57 = vpop.f32.mrb[37].mxu0  ;;  %s2679_s15 = scalar_lea.hbm %s2731_s7, %s1746_s20 }
 0xbe8   : > { %v1469_v58 = vpop.f32.mrb[38].mxu0 }
 0xbe9   : > { %v1912_v59 = vpop.f32.mrb[39].mxu0 }
 0xc2c   : > { %v1474_v60 = vpop.permute.xlu1 %1473 }
 0xc2d   : > { %v1484_v62 = vsel %vm397_vm2, %v1133_v42, %v1474_v60 }
 0xc51   : > { %v1478_v61 = vpop.permute.xlu0 %1477 }
 0xc52   : > { %v1485_v0 = vsel %vm848_vm4, %v1484_v62, %v1478_v61 }
 0xc59   : > { %v1482_v63 = vpop.permute.xlu1 %1481 }
 0xc5a   : > { %v1486_v1 = vsel %vm850_vm5, %v1485_v0, %v1482_v63 }
 0xc5b   : > { %v1487_v2 = vpack.c.bf16 %v1486_v1, %v1486_v1 }
 0xc5d   : > { %1918 = vmatmul.mubr.msk.bf16.vlgmr.msra.gmra.mrb[36].mxu1 %vm349_vm1, %v1487_v2 }
 0xd30   : > { %v1550_v4 = vpop.f32.mrb[36].mxu1 }
 0xd31   : > { %v1551_v5 = vadd.f32 %v1737_v3, %v1550_v4  ;;  %v1919_v6 = vpop.f32.mrb[37].mxu1 }
 0xd32   : > { %v1553_v7 = vpop.f32.mrb[38].mxu1 }
 0xd33   : > { %v1920_v8 = vpop.f32.mrb[39].mxu1  ;;  %v1556_v9 = vadd.f32 %v1551_v5, %v2569_v11  ;;  %v1742_v11 = vld [vmem:[%s2729_s5 + $0x1] ss:$0 sm:$0xff] }
 0xd35   : > { %v1557_v12 = vsel %vm349_vm1, %v1556_v9, 0.0 }
 0xd36   : > { %1558 = vadd.xlane.f32.xlu0 %v1557_v12 }
 0xdc3   : > { %v1559_v10 = vpop.xlane.xlu0 %1558 }
 0xdc4   : > { %v1560_v13 = vmul.f32 0.03125, %v1559_v10 }
 0xdc6   : > { %v1561_v14 = vsub.f32 %v1556_v9, %v1560_v13 }
 0xdc8   : > { %v1562_v15 = vmul.f32 %v1561_v14, %v1561_v14 }
 0xdca   : > { %v1563_v16 = vsel %vm349_vm1, %v1562_v15, 0.0 }
 0xdcb   : > { %1564 = vadd.xlane.f32.xlu1 %v1563_v16 }
 0xe58   : > { %v1565_v18 = vpop.xlane.xlu1 %1564 }
 0xe59   : > { %v1566_v19 = vmul.f32 0.03125, %v1565_v18 }
 0xe5b   : > { %v1567_v20 = vadd.f32 1e-05, %v1566_v19 }
 0xe5d   : > { %2048 = vrsqrt.f32 %v1567_v20 }
 0xe67   : > { %v2049_v21 = vpop.eup %2048 }
 0xe68   : > { %v1569_v22 = vmul.f32 %v2049_v21, %v1561_v14 }
 0xe6a   : > { %v1578_v24 = vmul.f32 %v1742_v11, %v1569_v22 }
 0xe6c   : > { %v1587_v25 = vadd.f32 %v1744_v23, %v1578_v24 }
 0xe6e   : > { %1588 = vst.msk [vmem:[%s322_s22] sm:$0xff] %vm349_vm1, %v1587_v25 }
 0xe6f   : > { %2149 = shalt.err (!%p2146_p2)
}
 0xe70   : > { %s2150_s12 = scalar_lea.hbm %s2679_s15, 128  ;;  %s2154_s20 = scalar_lea.hbm %s2731_s7, 256 }
 0xe71   : > { %p2151_p13 = scmp.ne.s32.totalorder %s2679_s15, %s2150_s12  ;;  %p2155_p4 = scmp.lt.u32.totalorder %s2679_s15, %s2731_s7 }
 0xe72   : > { %p2156_p5 = scmp.lt.u32.totalorder %s2154_s20, %s2150_s12  ;;  %p2158_p11 = scmp.lt.u32.totalorder %s2150_s12, %s2679_s15 }
 0xe73   : > { %p2152_p6 = pnand %p2151_p13, %p2761_p0 }
 0xe74   : > { %p2157_p8 = por %p2156_p5, %p2155_p4 }
 0xe75   : > { %p2153_p10 = pneg %p2152_p6 }
 0xe76   : > { %p2159_p1 = por %p2158_p11, %p2157_p8 }
 0xe78   : > { %p2160_p3 = pnand %p2159_p1, %p2153_p10 }
 0xe7a   : > { %2163 = shalt.err (!%p2160_p3)
}
 0xe7b   : > { %1931 = dma.vmem_to_hbm [thread:$0]  (%p2761_p0), %s2681_s10, 128, %s2679_s15, %s1590_s19  }
 0xe7c PF: > { %s1615_s18 = sand.u32 1, %s2194_s24   ;;  %p2762_p7 = scmp.ne.s32.totalorder %s2744_s8, 0 }
 0xe7d   : > { %p2763_p9 = scmp.ge.s32.totalorder %s2206_s27, 2  ;;  %s1616_s21 = scalar_lea.sflag [#allocation4], %s1615_s18 }
 0xe7f   : > { %p1945_p12 = pnand %p2763_p9, %p2762_p7 }
 0xe81   : > { %2189 = dma.done.wait (!%p1945_p12), %s1616_s21, 128  }
 0xe82   : > { %2191 = vsyncadd (!%p1945_p12), %s1616_s21, 4294967168  ;;  %p21_p2 = scmp.ge.s32.totalorder %s2380_s13, 4   ;;  %s2764_s24 = smov %s2198_s25 }
 0xe83   : > { %s2765_s25 = smov %s2202_s26  ;;  %s2766_s26 = smov %s2396_s17 }
 0xe84   : > { %s2767_s27 = smov %s2380_s13  ;;  %23 = sbr.rel (!%p21_p2) target bundleno = 6 (0x6), region = 107 }
 0xe8b   :  { %1621 = vsyncpa [#allocation3], 1 }
 0xe8c   :  { %1623 = vsyncpa [#allocation3 + $0x1], 1 }
 0xe8d   :  { %1624 = vsyncpa [#allocation6], 1 }
 0xe8e   :  { %1625 = vsyncpa [#allocation4], 1 }
 0xe8f   :  { %1627 = vsyncpa [#allocation4 + $0x1], 1 }

</bundles_post_ra>
